<compile_context>
chip_gen: v5e
topology: v5e:2x2
jax: 0.10.0
libtpu: 0.0.40
codegen_flags: <defaults>
</compile_context>

<pallas_src>
import functools

import jax
import jax.numpy as jnp
from jax import lax
from jax.experimental import pallas as pl
from jax.experimental.pallas import tpu as pltpu


def _fused_kernel(*refs, H, W, n_layers):
    """Whole CityGeneral network for one batch element.

    refs = (x_ref, w_0, bias_0, ..., w_{L-1}, bias_{L-1}, o_ref)
      x_ref : (1, Cin0p, H*W)    NCHW input, flattened spatially (channels padded to x8)
      w_i   : (Cout_i, 9*Cin_i)  im2col weight matrix, tap-major ((dy, dx) row major)
      bias_i: (Cout_i, H*W) for layer 0 (conv bias + MountainPadder term), else (Cout_i, 1)
      o_ref : (1, 4, H*W)        flattened-NCHW output slab for this batch element
    """
    x_ref = refs[0]
    o_ref = refs[-1]
    wb = refs[1:-1]
    HW = H * W

    # Horizontal (row-wrap) validity masks, shared by every layer.
    col = lax.broadcasted_iota(jnp.int32, (1, HW), 1) % W
    not_left = (col != 0).astype(jnp.float32)        # source column x-1 is in bounds
    not_right = (col != W - 1).astype(jnp.float32)   # source column x+1 is in bounds

    a = x_ref[0].astype(jnp.float32)                 # (Cin, H*W), lane dense
    for li in range(n_layers):
        w_ref = wb[2 * li]
        b_ref = wb[2 * li + 1]
        cin = a.shape[0]

        # Zero-extend the flat spatial axis by W+1 on each side so vertical
        # out-of-bounds taps read zeros; horizontal wrap is handled by masks.
        zpad = jnp.zeros((cin, W + 1), jnp.float32)
        a_ext = jnp.concatenate([zpad, a, zpad], axis=1)   # (cin, HW + 2W + 2)

        patches = []
        for dy in (-1, 0, 1):
            for dx in (-1, 0, 1):
                start = (W + 1) + dy * W + dx
                s = a_ext[:, start:start + HW]             # shifted activation
                if dx == -1:
                    s = s * not_left
                elif dx == 1:
                    s = s * not_right
                patches.append(s)
        p = jnp.concatenate(patches, axis=0)               # (9*cin, HW) im2col matrix

        acc = jnp.dot(w_ref[...], p, preferred_element_type=jnp.float32)
        acc = acc + b_ref[...]                             # (cout, HW)

        if li < n_layers - 1:
            a = jnp.where(acc > 0, acc, 0.01 * acc)        # nn.LeakyReLU (slope 0.01)
        else:
            a = 1.0 / (1.0 + jnp.exp(-acc))                # nn.Sigmoid

    o_ref[0] = a.astype(o_ref.dtype)


def _mountain_bias(w0, H, W):
    """Per-pixel additive term from MountainPadder: channel-0 padding value is 1."""
    cout = w0.shape[0]
    ys = jnp.arange(H)[:, None]
    xs = jnp.arange(W)[None, :]
    rows = []
    for dy in (-1, 0, 1):
        for dx in (-1, 0, 1):
            oob = ((ys + dy < 0) | (ys + dy >= H) |
                   (xs + dx < 0) | (xs + dx >= W))
            rows.append(oob.reshape(-1).astype(jnp.float32))
    oob_mat = jnp.stack(rows, axis=0)                      # (9, H*W), tap-major
    w_ch0 = w0[:, 0, :, :].reshape(cout, 9)                # same tap order
    return jnp.dot(w_ch0, oob_mat)                         # (cout, H*W)


def _to_im2col(w):
    """(Cout, Cin, 3, 3) torch-style OIHW -> (Cout, 9*Cin), tap-major ((dy,dx) row major)."""
    cout, cin = w.shape[0], w.shape[1]
    return jnp.transpose(w, (0, 2, 3, 1)).reshape(cout, 9 * cin)


@jax.jit
def city_general_forward(x_nchw, params):
    """x_nchw: (B, 5, H, W) float32 -> (B, 4*H*W) float32 (matches torch .view order)."""
    (w0, b0), mids, (wl, bl) = params
    B, cin0, H, W = x_nchw.shape
    HW = H * W

    # Pad first-layer channels up to a multiple of 8 (sublane alignment); the
    # extra zero channels contribute nothing.
    cpad = (-cin0) % 8
    x_flat = x_nchw.reshape(B, cin0, HW)
    if cpad:
        x_flat = jnp.concatenate(
            [x_flat, jnp.zeros((B, cpad, HW), x_flat.dtype)], axis=1)
        w0p = jnp.pad(w0, ((0, 0), (0, cpad), (0, 0), (0, 0)))
    else:
        w0p = w0

    layers = [(w0p, b0)] + list(mids) + [(wl, bl)]
    n_layers = len(layers)

    inputs = [x_flat]
    in_specs = [pl.BlockSpec((1, cin0 + cpad, HW), lambda bi: (bi, 0, 0))]
    for li, (w, b) in enumerate(layers):
        w_mat = _to_im2col(w)
        if li == 0:
            bias = b[:, None] + _mountain_bias(w0, H, W)   # (cout, HW) bias map
        else:
            bias = b[:, None]                              # (cout, 1)
        inputs += [w_mat, bias]
        in_specs += [pl.BlockSpec(w_mat.shape, lambda bi: (0, 0)),
                     pl.BlockSpec(bias.shape, lambda bi: (0, 0))]

    kernel = functools.partial(_fused_kernel, H=H, W=W, n_layers=n_layers)
    out = pl.pallas_call(
        kernel,
        out_shape=jax.ShapeDtypeStruct((B, 4, HW), jnp.float32),
        grid=(B,),
        in_specs=in_specs,
        out_specs=pl.BlockSpec((1, 4, HW), lambda bi: (bi, 0, 0)),
        compiler_params=pltpu.CompilerParams(
            dimension_semantics=("parallel",)),
    )(*inputs)
    return out.reshape(B, 4 * HW)   # contiguous collapse == torch .view(B, 4*H*W)


def _init_conv(key, cin, cout):
    # Mimics torch Conv2d default init scale: U(-1/sqrt(fan_in), +1/sqrt(fan_in)).
    kw, kb = jax.random.split(key)
    bound = float(1.0 / (cin * 9) ** 0.5)
    w = jax.random.uniform(kw, (cout, cin, 3, 3), jnp.float32, -bound, bound)
    b = jax.random.uniform(kb, (cout,), jnp.float32, -bound, bound)
    return w, b


def init_city_general_params(key, depth, hidden_channels=16):
    keys = jax.random.split(key, depth + 2)
    first = _init_conv(keys[0], 5, hidden_channels)
    mids = [_init_conv(keys[1 + i], hidden_channels, hidden_channels)
            for i in range(depth)]
    last = _init_conv(keys[depth + 1], hidden_channels, 4)
    return first, mids, last


def _reference_forward(x_nchw, params):
    """Pure-JAX (XLA conv) reference of the PyTorch module, for validation."""
    (w0, b0), mids, (wl, bl) = params
    B, _, H, W = x_nchw.shape
    dn = ("NCHW", "OIHW", "NCHW")
    hp = lax.Precision.HIGHEST

    xp = jnp.pad(x_nchw, ((0, 0), (0, 0), (1, 1), (1, 1)))
    border = jnp.pad(jnp.zeros((H, W), x_nchw.dtype), ((1, 1), (1, 1)),
                     constant_values=1.0)
    xp = xp.at[:, 0].add(border[None])                    # MountainPadder

    h = lax.conv_general_dilated(xp, w0, (1, 1), "VALID",
                                 dimension_numbers=dn, precision=hp)
    h = h + b0[None, :, None, None]
    h = jnp.where(h > 0, h, 0.01 * h)
    for (w, b) in mids:
        h = lax.conv_general_dilated(h, w, (1, 1), "SAME",
                                     dimension_numbers=dn, precision=hp)
        h = h + b[None, :, None, None]
        h = jnp.where(h > 0, h, 0.01 * h)
    o = lax.conv_general_dilated(h, wl, (1, 1), "SAME",
                                 dimension_numbers=dn, precision=hp)
    o = o + bl[None, :, None, None]
    o = 1.0 / (1.0 + jnp.exp(-o))
    return o.reshape(B, -1)


if __name__ == "__main__":
    key = jax.random.PRNGKey(0)
    k_param, k_x = jax.random.split(key)

    batch, in_channels, H, W = 2, 5, 16, 16
    depth, hidden_channels = 2, 16

    params = init_city_general_params(k_param, depth, hidden_channels)
    x = jax.random.normal(k_x, (batch, in_channels, H, W), jnp.float32)

    out = jax.block_until_ready(city_general_forward(x, params))
    assert out.shape == (batch, 4 * H * W)

    ref = jax.block_until_ready(_reference_forward(x, params))
    max_err = float(jnp.max(jnp.abs(out - ref)))
    assert max_err < 5e-3, f"mismatch vs reference: max abs err {max_err}"

    print("KERNEL_OK")
</pallas_src>

<mosaic_0001>
module attributes {stable_mosaic.version = 11 : i64} {
  func.func @_fused_kernel(%arg0: i32, %arg1: memref<1x8x256xf32, #tpu.memory_space<vmem>>, %arg2: memref<16x72xf32, #tpu.memory_space<vmem>>, %arg3: memref<16x256xf32, #tpu.memory_space<vmem>>, %arg4: memref<16x144xf32, #tpu.memory_space<vmem>>, %arg5: memref<16x1xf32, #tpu.memory_space<vmem>>, %arg6: memref<16x144xf32, #tpu.memory_space<vmem>>, %arg7: memref<16x1xf32, #tpu.memory_space<vmem>>, %arg8: memref<4x144xf32, #tpu.memory_space<vmem>>, %arg9: memref<4x1xf32, #tpu.memory_space<vmem>>, %arg10: memref<1x4x256xf32, #tpu.memory_space<vmem>>) attributes {dimension_semantics = [#tpu.dimension_semantics<parallel>], iteration_bounds = array<i64: 2>, scalar_prefetch = 0 : i64, scratch_operands = 0 : i64, tpu.core_type = #tpu.core_type<tc>, window_params = [{transform_indices = @transform_0, window_bounds = array<i64: 1, 8, 256>}, {pipeline_mode = #tpu.pipeline_mode<synchronous>, transform_indices = @transform_1, window_bounds = array<i64: 16, 72>}, {pipeline_mode = #tpu.pipeline_mode<synchronous>, transform_indices = @transform_2, window_bounds = array<i64: 16, 256>}, {pipeline_mode = #tpu.pipeline_mode<synchronous>, transform_indices = @transform_3, window_bounds = array<i64: 16, 144>}, {pipeline_mode = #tpu.pipeline_mode<synchronous>, transform_indices = @transform_4, window_bounds = array<i64: 16, 1>}, {pipeline_mode = #tpu.pipeline_mode<synchronous>, transform_indices = @transform_5, window_bounds = array<i64: 16, 144>}, {pipeline_mode = #tpu.pipeline_mode<synchronous>, transform_indices = @transform_6, window_bounds = array<i64: 16, 1>}, {pipeline_mode = #tpu.pipeline_mode<synchronous>, transform_indices = @transform_7, window_bounds = array<i64: 4, 144>}, {pipeline_mode = #tpu.pipeline_mode<synchronous>, transform_indices = @transform_8, window_bounds = array<i64: 4, 1>}, {transform_indices = @transform_9, window_bounds = array<i64: 1, 4, 256>}]} {
    %0 = tpu.iota {dimensions = array<i32: 1>} : vector<1x256xi32>
    %c16_i32 = arith.constant 16 : i32
    %c0_i32 = arith.constant 0 : i32
    %1 = arith.cmpi eq, %c16_i32, %c0_i32 : i32
    %c1_i32 = arith.constant 1 : i32
    %2 = arith.select %1, %c1_i32, %c16_i32 : i32
    %3 = vector.broadcast %2 : i32 to vector<1x256xi32>
    %4 = arith.remsi %0, %3 : vector<1x256xi32>
    %c0_i32_0 = arith.constant 0 : i32
    %5 = vector.broadcast %c0_i32_0 : i32 to vector<1x256xi32>
    %6 = arith.cmpi ne, %4, %5 : vector<1x256xi32>
    %c0_i32_1 = arith.constant 0 : i32
    %7 = vector.broadcast %c0_i32_1 : i32 to vector<1x256xi32>
    %8 = arith.cmpi slt, %4, %7 : vector<1x256xi32>
    %c0_i32_2 = arith.constant 0 : i32
    %9 = arith.cmpi slt, %2, %c0_i32_2 : i32
    %10 = vector.broadcast %9 : i1 to vector<1x256xi1>
    %11 = vector.broadcast %10 : vector<1x256xi1> to vector<1x256xi1>
    %12 = arith.xori %8, %11 : vector<1x256xi1>
    %13 = arith.andi %12, %6 : vector<1x256xi1>
    %14 = vector.broadcast %2 : i32 to vector<1x256xi32>
    %15 = arith.addi %4, %14 : vector<1x256xi32>
    %16 = arith.select %13, %15, %4 : vector<1x256xi1>, vector<1x256xi32>
    %c0_i32_3 = arith.constant 0 : i32
    %17 = vector.broadcast %c0_i32_3 : i32 to vector<1x256xi32>
    %18 = arith.cmpi ne, %16, %17 : vector<1x256xi32>
    %19 = arith.extui %18 : vector<1x256xi1> to vector<1x256xi32>
    %20 = arith.sitofp %19 : vector<1x256xi32> to vector<1x256xf32>
    %c15_i32 = arith.constant 15 : i32
    %21 = vector.broadcast %c15_i32 : i32 to vector<1x256xi32>
    %22 = arith.cmpi ne, %16, %21 : vector<1x256xi32>
    %23 = arith.extui %22 : vector<1x256xi1> to vector<1x256xi32>
    %24 = arith.sitofp %23 : vector<1x256xi32> to vector<1x256xf32>
    %c0 = arith.constant 0 : index
    %c0_4 = arith.constant 0 : index
    %c0_5 = arith.constant 0 : index
    %25 = vector.load %arg1[%c0, %c0_4, %c0_5] : memref<1x8x256xf32, #tpu.memory_space<vmem>>, vector<1x8x256xf32>
    %26 = vector.shape_cast %25 : vector<1x8x256xf32> to vector<8x256xf32>
    %cst = arith.constant 0.000000e+00 : f32
    %27 = vector.broadcast %cst : f32 to vector<8x17xf32>
    %28 = tpu.concatenate %27, %26, %27 in 1 : vector<8x17xf32>, vector<8x256xf32>, vector<8x17xf32> -> vector<8x290xf32>
    %29 = vector.extract_strided_slice %28 {offsets = [0, 0], sizes = [8, 256], strides = [1, 1]} : vector<8x290xf32> to vector<8x256xf32>
    %30 = vector.broadcast %20 : vector<1x256xf32> to vector<8x256xf32>
    %31 = arith.mulf %29, %30 : vector<8x256xf32>
    %32 = vector.extract_strided_slice %28 {offsets = [0, 1], sizes = [8, 256], strides = [1, 1]} : vector<8x290xf32> to vector<8x256xf32>
    %33 = vector.extract_strided_slice %28 {offsets = [0, 2], sizes = [8, 256], strides = [1, 1]} : vector<8x290xf32> to vector<8x256xf32>
    %34 = vector.broadcast %24 : vector<1x256xf32> to vector<8x256xf32>
    %35 = arith.mulf %33, %34 : vector<8x256xf32>
    %36 = vector.extract_strided_slice %28 {offsets = [0, 16], sizes = [8, 256], strides = [1, 1]} : vector<8x290xf32> to vector<8x256xf32>
    %37 = vector.broadcast %20 : vector<1x256xf32> to vector<8x256xf32>
    %38 = arith.mulf %36, %37 : vector<8x256xf32>
    %39 = vector.extract_strided_slice %28 {offsets = [0, 17], sizes = [8, 256], strides = [1, 1]} : vector<8x290xf32> to vector<8x256xf32>
    %40 = vector.extract_strided_slice %28 {offsets = [0, 18], sizes = [8, 256], strides = [1, 1]} : vector<8x290xf32> to vector<8x256xf32>
    %41 = vector.broadcast %24 : vector<1x256xf32> to vector<8x256xf32>
    %42 = arith.mulf %40, %41 : vector<8x256xf32>
    %43 = vector.extract_strided_slice %28 {offsets = [0, 32], sizes = [8, 256], strides = [1, 1]} : vector<8x290xf32> to vector<8x256xf32>
    %44 = vector.broadcast %20 : vector<1x256xf32> to vector<8x256xf32>
    %45 = arith.mulf %43, %44 : vector<8x256xf32>
    %46 = vector.extract_strided_slice %28 {offsets = [0, 33], sizes = [8, 256], strides = [1, 1]} : vector<8x290xf32> to vector<8x256xf32>
    %47 = vector.extract_strided_slice %28 {offsets = [0, 34], sizes = [8, 256], strides = [1, 1]} : vector<8x290xf32> to vector<8x256xf32>
    %48 = vector.broadcast %24 : vector<1x256xf32> to vector<8x256xf32>
    %49 = arith.mulf %47, %48 : vector<8x256xf32>
    %50 = tpu.concatenate %31, %32, %35, %38, %39, %42, %45, %46, %49 in 0 : vector<8x256xf32>, vector<8x256xf32>, vector<8x256xf32>, vector<8x256xf32>, vector<8x256xf32>, vector<8x256xf32>, vector<8x256xf32>, vector<8x256xf32>, vector<8x256xf32> -> vector<72x256xf32>
    %c0_6 = arith.constant 0 : index
    %c0_7 = arith.constant 0 : index
    %51 = vector.load %arg2[%c0_6, %c0_7] : memref<16x72xf32, #tpu.memory_space<vmem>>, vector<16x72xf32>
    %cst_8 = arith.constant dense<0.000000e+00> : vector<16x256xf32>
    %52 = tpu.matmul %51, %50, %cst_8 {dimension_numbers = #tpu.dot_dimension_numbers<[1], [0], [0], [1], [0, 0, 1, 1], [], []>} : vector<16x72xf32>, vector<72x256xf32>, vector<16x256xf32> -> vector<16x256xf32>
    %c0_9 = arith.constant 0 : index
    %c0_10 = arith.constant 0 : index
    %53 = vector.load %arg3[%c0_9, %c0_10] : memref<16x256xf32, #tpu.memory_space<vmem>>, vector<16x256xf32>
    %54 = arith.addf %52, %53 : vector<16x256xf32>
    %cst_11 = arith.constant 0.000000e+00 : f32
    %55 = vector.broadcast %cst_11 : f32 to vector<16x256xf32>
    %56 = arith.cmpf ogt, %54, %55 : vector<16x256xf32>
    %cst_12 = arith.constant 0.00999999977 : f32
    %57 = vector.broadcast %cst_12 : f32 to vector<16x256xf32>
    %58 = arith.mulf %57, %54 : vector<16x256xf32>
    %59 = arith.select %56, %54, %58 : vector<16x256xi1>, vector<16x256xf32>
    %cst_13 = arith.constant 0.000000e+00 : f32
    %60 = vector.broadcast %cst_13 : f32 to vector<16x17xf32>
    %61 = tpu.concatenate %60, %59, %60 in 1 : vector<16x17xf32>, vector<16x256xf32>, vector<16x17xf32> -> vector<16x290xf32>
    %62 = vector.extract_strided_slice %61 {offsets = [0, 0], sizes = [16, 256], strides = [1, 1]} : vector<16x290xf32> to vector<16x256xf32>
    %63 = vector.broadcast %20 : vector<1x256xf32> to vector<16x256xf32>
    %64 = arith.mulf %62, %63 : vector<16x256xf32>
    %65 = vector.extract_strided_slice %61 {offsets = [0, 1], sizes = [16, 256], strides = [1, 1]} : vector<16x290xf32> to vector<16x256xf32>
    %66 = vector.extract_strided_slice %61 {offsets = [0, 2], sizes = [16, 256], strides = [1, 1]} : vector<16x290xf32> to vector<16x256xf32>
    %67 = vector.broadcast %24 : vector<1x256xf32> to vector<16x256xf32>
    %68 = arith.mulf %66, %67 : vector<16x256xf32>
    %69 = vector.extract_strided_slice %61 {offsets = [0, 16], sizes = [16, 256], strides = [1, 1]} : vector<16x290xf32> to vector<16x256xf32>
    %70 = vector.broadcast %20 : vector<1x256xf32> to vector<16x256xf32>
    %71 = arith.mulf %69, %70 : vector<16x256xf32>
    %72 = vector.extract_strided_slice %61 {offsets = [0, 17], sizes = [16, 256], strides = [1, 1]} : vector<16x290xf32> to vector<16x256xf32>
    %73 = vector.extract_strided_slice %61 {offsets = [0, 18], sizes = [16, 256], strides = [1, 1]} : vector<16x290xf32> to vector<16x256xf32>
    %74 = vector.broadcast %24 : vector<1x256xf32> to vector<16x256xf32>
    %75 = arith.mulf %73, %74 : vector<16x256xf32>
    %76 = vector.extract_strided_slice %61 {offsets = [0, 32], sizes = [16, 256], strides = [1, 1]} : vector<16x290xf32> to vector<16x256xf32>
    %77 = vector.broadcast %20 : vector<1x256xf32> to vector<16x256xf32>
    %78 = arith.mulf %76, %77 : vector<16x256xf32>
    %79 = vector.extract_strided_slice %61 {offsets = [0, 33], sizes = [16, 256], strides = [1, 1]} : vector<16x290xf32> to vector<16x256xf32>
    %80 = vector.extract_strided_slice %61 {offsets = [0, 34], sizes = [16, 256], strides = [1, 1]} : vector<16x290xf32> to vector<16x256xf32>
    %81 = vector.broadcast %24 : vector<1x256xf32> to vector<16x256xf32>
    %82 = arith.mulf %80, %81 : vector<16x256xf32>
    %83 = tpu.concatenate %64, %65, %68, %71, %72, %75, %78, %79, %82 in 0 : vector<16x256xf32>, vector<16x256xf32>, vector<16x256xf32>, vector<16x256xf32>, vector<16x256xf32>, vector<16x256xf32>, vector<16x256xf32>, vector<16x256xf32>, vector<16x256xf32> -> vector<144x256xf32>
    %c0_14 = arith.constant 0 : index
    %c0_15 = arith.constant 0 : index
    %84 = vector.load %arg4[%c0_14, %c0_15] : memref<16x144xf32, #tpu.memory_space<vmem>>, vector<16x144xf32>
    %cst_16 = arith.constant dense<0.000000e+00> : vector<16x256xf32>
    %85 = tpu.matmul %84, %83, %cst_16 {dimension_numbers = #tpu.dot_dimension_numbers<[1], [0], [0], [1], [0, 0, 1, 1], [], []>} : vector<16x144xf32>, vector<144x256xf32>, vector<16x256xf32> -> vector<16x256xf32>
    %c0_17 = arith.constant 0 : index
    %c0_18 = arith.constant 0 : index
    %86 = vector.load %arg5[%c0_17, %c0_18] : memref<16x1xf32, #tpu.memory_space<vmem>>, vector<16x1xf32>
    %87 = vector.broadcast %86 : vector<16x1xf32> to vector<16x256xf32>
    %88 = arith.addf %85, %87 : vector<16x256xf32>
    %cst_19 = arith.constant 0.000000e+00 : f32
    %89 = vector.broadcast %cst_19 : f32 to vector<16x256xf32>
    %90 = arith.cmpf ogt, %88, %89 : vector<16x256xf32>
    %cst_20 = arith.constant 0.00999999977 : f32
    %91 = vector.broadcast %cst_20 : f32 to vector<16x256xf32>
    %92 = arith.mulf %91, %88 : vector<16x256xf32>
    %93 = arith.select %90, %88, %92 : vector<16x256xi1>, vector<16x256xf32>
    %cst_21 = arith.constant 0.000000e+00 : f32
    %94 = vector.broadcast %cst_21 : f32 to vector<16x17xf32>
    %95 = tpu.concatenate %94, %93, %94 in 1 : vector<16x17xf32>, vector<16x256xf32>, vector<16x17xf32> -> vector<16x290xf32>
    %96 = vector.extract_strided_slice %95 {offsets = [0, 0], sizes = [16, 256], strides = [1, 1]} : vector<16x290xf32> to vector<16x256xf32>
    %97 = vector.broadcast %20 : vector<1x256xf32> to vector<16x256xf32>
    %98 = arith.mulf %96, %97 : vector<16x256xf32>
    %99 = vector.extract_strided_slice %95 {offsets = [0, 1], sizes = [16, 256], strides = [1, 1]} : vector<16x290xf32> to vector<16x256xf32>
    %100 = vector.extract_strided_slice %95 {offsets = [0, 2], sizes = [16, 256], strides = [1, 1]} : vector<16x290xf32> to vector<16x256xf32>
    %101 = vector.broadcast %24 : vector<1x256xf32> to vector<16x256xf32>
    %102 = arith.mulf %100, %101 : vector<16x256xf32>
    %103 = vector.extract_strided_slice %95 {offsets = [0, 16], sizes = [16, 256], strides = [1, 1]} : vector<16x290xf32> to vector<16x256xf32>
    %104 = vector.broadcast %20 : vector<1x256xf32> to vector<16x256xf32>
    %105 = arith.mulf %103, %104 : vector<16x256xf32>
    %106 = vector.extract_strided_slice %95 {offsets = [0, 17], sizes = [16, 256], strides = [1, 1]} : vector<16x290xf32> to vector<16x256xf32>
    %107 = vector.extract_strided_slice %95 {offsets = [0, 18], sizes = [16, 256], strides = [1, 1]} : vector<16x290xf32> to vector<16x256xf32>
    %108 = vector.broadcast %24 : vector<1x256xf32> to vector<16x256xf32>
    %109 = arith.mulf %107, %108 : vector<16x256xf32>
    %110 = vector.extract_strided_slice %95 {offsets = [0, 32], sizes = [16, 256], strides = [1, 1]} : vector<16x290xf32> to vector<16x256xf32>
    %111 = vector.broadcast %20 : vector<1x256xf32> to vector<16x256xf32>
    %112 = arith.mulf %110, %111 : vector<16x256xf32>
    %113 = vector.extract_strided_slice %95 {offsets = [0, 33], sizes = [16, 256], strides = [1, 1]} : vector<16x290xf32> to vector<16x256xf32>
    %114 = vector.extract_strided_slice %95 {offsets = [0, 34], sizes = [16, 256], strides = [1, 1]} : vector<16x290xf32> to vector<16x256xf32>
    %115 = vector.broadcast %24 : vector<1x256xf32> to vector<16x256xf32>
    %116 = arith.mulf %114, %115 : vector<16x256xf32>
    %117 = tpu.concatenate %98, %99, %102, %105, %106, %109, %112, %113, %116 in 0 : vector<16x256xf32>, vector<16x256xf32>, vector<16x256xf32>, vector<16x256xf32>, vector<16x256xf32>, vector<16x256xf32>, vector<16x256xf32>, vector<16x256xf32>, vector<16x256xf32> -> vector<144x256xf32>
    %c0_22 = arith.constant 0 : index
    %c0_23 = arith.constant 0 : index
    %118 = vector.load %arg6[%c0_22, %c0_23] : memref<16x144xf32, #tpu.memory_space<vmem>>, vector<16x144xf32>
    %cst_24 = arith.constant dense<0.000000e+00> : vector<16x256xf32>
    %119 = tpu.matmul %118, %117, %cst_24 {dimension_numbers = #tpu.dot_dimension_numbers<[1], [0], [0], [1], [0, 0, 1, 1], [], []>} : vector<16x144xf32>, vector<144x256xf32>, vector<16x256xf32> -> vector<16x256xf32>
    %c0_25 = arith.constant 0 : index
    %c0_26 = arith.constant 0 : index
    %120 = vector.load %arg7[%c0_25, %c0_26] : memref<16x1xf32, #tpu.memory_space<vmem>>, vector<16x1xf32>
    %121 = vector.broadcast %120 : vector<16x1xf32> to vector<16x256xf32>
    %122 = arith.addf %119, %121 : vector<16x256xf32>
    %cst_27 = arith.constant 0.000000e+00 : f32
    %123 = vector.broadcast %cst_27 : f32 to vector<16x256xf32>
    %124 = arith.cmpf ogt, %122, %123 : vector<16x256xf32>
    %cst_28 = arith.constant 0.00999999977 : f32
    %125 = vector.broadcast %cst_28 : f32 to vector<16x256xf32>
    %126 = arith.mulf %125, %122 : vector<16x256xf32>
    %127 = arith.select %124, %122, %126 : vector<16x256xi1>, vector<16x256xf32>
    %cst_29 = arith.constant 0.000000e+00 : f32
    %128 = vector.broadcast %cst_29 : f32 to vector<16x17xf32>
    %129 = tpu.concatenate %128, %127, %128 in 1 : vector<16x17xf32>, vector<16x256xf32>, vector<16x17xf32> -> vector<16x290xf32>
    %130 = vector.extract_strided_slice %129 {offsets = [0, 0], sizes = [16, 256], strides = [1, 1]} : vector<16x290xf32> to vector<16x256xf32>
    %131 = vector.broadcast %20 : vector<1x256xf32> to vector<16x256xf32>
    %132 = arith.mulf %130, %131 : vector<16x256xf32>
    %133 = vector.extract_strided_slice %129 {offsets = [0, 1], sizes = [16, 256], strides = [1, 1]} : vector<16x290xf32> to vector<16x256xf32>
    %134 = vector.extract_strided_slice %129 {offsets = [0, 2], sizes = [16, 256], strides = [1, 1]} : vector<16x290xf32> to vector<16x256xf32>
    %135 = vector.broadcast %24 : vector<1x256xf32> to vector<16x256xf32>
    %136 = arith.mulf %134, %135 : vector<16x256xf32>
    %137 = vector.extract_strided_slice %129 {offsets = [0, 16], sizes = [16, 256], strides = [1, 1]} : vector<16x290xf32> to vector<16x256xf32>
    %138 = vector.broadcast %20 : vector<1x256xf32> to vector<16x256xf32>
    %139 = arith.mulf %137, %138 : vector<16x256xf32>
    %140 = vector.extract_strided_slice %129 {offsets = [0, 17], sizes = [16, 256], strides = [1, 1]} : vector<16x290xf32> to vector<16x256xf32>
    %141 = vector.extract_strided_slice %129 {offsets = [0, 18], sizes = [16, 256], strides = [1, 1]} : vector<16x290xf32> to vector<16x256xf32>
    %142 = vector.broadcast %24 : vector<1x256xf32> to vector<16x256xf32>
    %143 = arith.mulf %141, %142 : vector<16x256xf32>
    %144 = vector.extract_strided_slice %129 {offsets = [0, 32], sizes = [16, 256], strides = [1, 1]} : vector<16x290xf32> to vector<16x256xf32>
    %145 = vector.broadcast %20 : vector<1x256xf32> to vector<16x256xf32>
    %146 = arith.mulf %144, %145 : vector<16x256xf32>
    %147 = vector.extract_strided_slice %129 {offsets = [0, 33], sizes = [16, 256], strides = [1, 1]} : vector<16x290xf32> to vector<16x256xf32>
    %148 = vector.extract_strided_slice %129 {offsets = [0, 34], sizes = [16, 256], strides = [1, 1]} : vector<16x290xf32> to vector<16x256xf32>
    %149 = vector.broadcast %24 : vector<1x256xf32> to vector<16x256xf32>
    %150 = arith.mulf %148, %149 : vector<16x256xf32>
    %151 = tpu.concatenate %132, %133, %136, %139, %140, %143, %146, %147, %150 in 0 : vector<16x256xf32>, vector<16x256xf32>, vector<16x256xf32>, vector<16x256xf32>, vector<16x256xf32>, vector<16x256xf32>, vector<16x256xf32>, vector<16x256xf32>, vector<16x256xf32> -> vector<144x256xf32>
    %c0_30 = arith.constant 0 : index
    %c0_31 = arith.constant 0 : index
    %152 = vector.load %arg8[%c0_30, %c0_31] : memref<4x144xf32, #tpu.memory_space<vmem>>, vector<4x144xf32>
    %cst_32 = arith.constant dense<0.000000e+00> : vector<4x256xf32>
    %153 = tpu.matmul %152, %151, %cst_32 {dimension_numbers = #tpu.dot_dimension_numbers<[1], [0], [0], [1], [0, 0, 1, 1], [], []>} : vector<4x144xf32>, vector<144x256xf32>, vector<4x256xf32> -> vector<4x256xf32>
    %c0_33 = arith.constant 0 : index
    %c0_34 = arith.constant 0 : index
    %154 = vector.load %arg9[%c0_33, %c0_34] : memref<4x1xf32, #tpu.memory_space<vmem>>, vector<4x1xf32>
    %155 = vector.broadcast %154 : vector<4x1xf32> to vector<4x256xf32>
    %156 = arith.addf %153, %155 : vector<4x256xf32>
    %cst_35 = arith.constant 0.000000e+00 : f32
    %157 = vector.broadcast %cst_35 : f32 to vector<4x256xf32>
    %158 = arith.subf %157, %156 : vector<4x256xf32>
    %159 = math.exp %158 : vector<4x256xf32>
    %cst_36 = arith.constant 1.000000e+00 : f32
    %160 = vector.broadcast %cst_36 : f32 to vector<4x256xf32>
    %161 = arith.addf %160, %159 : vector<4x256xf32>
    %cst_37 = arith.constant 1.000000e+00 : f32
    %162 = vector.broadcast %cst_37 : f32 to vector<4x256xf32>
    %163 = arith.divf %162, %161 : vector<4x256xf32>
    %c0_38 = arith.constant 0 : index
    %c0_39 = arith.constant 0 : index
    %c0_40 = arith.constant 0 : index
    %164 = vector.load %arg10[%c0_38, %c0_39, %c0_40] : memref<1x4x256xf32, #tpu.memory_space<vmem>>, vector<1x4x256xf32>
    %165 = vector.shape_cast %164 : vector<1x4x256xf32> to vector<4x256xf32>
    %166 = vector.shape_cast %163 : vector<4x256xf32> to vector<1x4x256xf32>
    tpu.vector_store %arg10[%c0_38, %c0_39, %c0_40], %166 {strides = array<i32>} : memref<1x4x256xf32, #tpu.memory_space<vmem>>, vector<1x4x256xf32>,
    return
  }
  func.func @transform_0(%arg0: i32) -> (i32, i32, i32) {
    %c0_i32 = arith.constant 0 : i32
    %c0_i32_0 = arith.constant 0 : i32
    %c0_i32_1 = arith.constant 0 : i32
    return %arg0, %c0_i32, %c0_i32_0 : i32, i32, i32
  }
  func.func @transform_1(%arg0: i32) -> (i32, i32) {
    %c0_i32 = arith.constant 0 : i32
    %c0_i32_0 = arith.constant 0 : i32
    %c0_i32_1 = arith.constant 0 : i32
    return %c0_i32, %c0_i32_0 : i32, i32
  }
  func.func @transform_2(%arg0: i32) -> (i32, i32) {
    %c0_i32 = arith.constant 0 : i32
    %c0_i32_0 = arith.constant 0 : i32
    %c0_i32_1 = arith.constant 0 : i32
    return %c0_i32, %c0_i32_0 : i32, i32
  }
  func.func @transform_3(%arg0: i32) -> (i32, i32) {
    %c0_i32 = arith.constant 0 : i32
    %c0_i32_0 = arith.constant 0 : i32
    %c0_i32_1 = arith.constant 0 : i32
    return %c0_i32, %c0_i32_0 : i32, i32
  }
  func.func @transform_4(%arg0: i32) -> (i32, i32) {
    %c0_i32 = arith.constant 0 : i32
    %c0_i32_0 = arith.constant 0 : i32
    %c0_i32_1 = arith.constant 0 : i32
    return %c0_i32, %c0_i32_0 : i32, i32
  }
  func.func @transform_5(%arg0: i32) -> (i32, i32) {
    %c0_i32 = arith.constant 0 : i32
    %c0_i32_0 = arith.constant 0 : i32
    %c0_i32_1 = arith.constant 0 : i32
    return %c0_i32, %c0_i32_0 : i32, i32
  }
  func.func @transform_6(%arg0: i32) -> (i32, i32) {
    %c0_i32 = arith.constant 0 : i32
    %c0_i32_0 = arith.constant 0 : i32
    %c0_i32_1 = arith.constant 0 : i32
    return %c0_i32, %c0_i32_0 : i32, i32
  }
  func.func @transform_7(%arg0: i32) -> (i32, i32) {
    %c0_i32 = arith.constant 0 : i32
    %c0_i32_0 = arith.constant 0 : i32
    %c0_i32_1 = arith.constant 0 : i32
    return %c0_i32, %c0_i32_0 : i32, i32
  }
  func.func @transform_8(%arg0: i32) -> (i32, i32) {
    %c0_i32 = arith.constant 0 : i32
    %c0_i32_0 = arith.constant 0 : i32
    %c0_i32_1 = arith.constant 0 : i32
    return %c0_i32, %c0_i32_0 : i32, i32
  }
  func.func @transform_9(%arg0: i32) -> (i32, i32, i32) {
    %c0_i32 = arith.constant 0 : i32
    %c0_i32_0 = arith.constant 0 : i32
    %c0_i32_1 = arith.constant 0 : i32
    return %arg0, %c0_i32, %c0_i32_0 : i32, i32, i32
  }
}

</mosaic_0001>

<bundles_post_ra>
// kernel: squeeze.1
= control target key start
LH: loop header
LB: loop body
LE: loop exit
PB: predicated region body
PF: predicated region fallthrough
CT: control target
= control target key end

     0   :  { %vm48_vm0 = vcmask 130048   ;;  %s101_s0 = inlined_call_operand.vmem [shape: bf16[16,1,3,3], index: 0, kind: input, shape index: {}]   ;;  %s102_s1 = inlined_call_operand.vmem [shape: bf16[16,9], index: 1, kind: output, shape index: {}]  }
   0x1   :  { %v74_v0 = vld [vmem:[%s101_s0 + $0x2] sm:$0xf]   ;;  %v43_v1 = vld [vmem:[%s101_s0] sm:$0x3] }
   0x2   :  { %v15_v2 = vunpack.c.l.bf16 %v74_v0  ;;  %v44_v3 = vunpack.c.l.bf16 %v43_v1 }
   0x4   :  { %18 = vst [vmem:[#allocation1 - $0x4] sm:$0xf0] %v15_v2 }
   0x5   :  { %33 = vst [vmem:[#allocation1 + $0x10] sm:$0xf] %v15_v2 }
   0x6   :  { %46 = vst [vmem:[#allocation1 + $0x8] sm:$0xf] %v44_v3 }
   0xb   :  { %v56_v4 = vld [vmem:[#allocation1] sm:$0x7]  }
   0xc   :  { %v51_v5 = vld [vmem:[#allocation1 + $0x10] sm:$0x7]   ;;  %59 = vst.msk [vmem:[#allocation0 + $0x6] sm:$0x7] %vm48_vm0, %v56_v4  }
   0xd   :  { %v47_v6 = vld [vmem:[#allocation1 + $0x8] sm:$0x7]   ;;  %54 = vst.msk [vmem:[#allocation0 + $0x3] sm:$0x7] %vm48_vm0, %v51_v5  }
   0xe   :  { %49 = vst.msk [vmem:[#allocation0] sm:$0x7] %vm48_vm0, %v47_v6  }
  0x13   :  { %v68_v7 = vld [vmem:[#allocation0 + $0x8] sm:$0xff] }
  0x15   :  { %v62_v8 = vld [vmem:[#allocation0] sm:$0xff] }
  0x16   :  { %v80_v9 = vpack.c.bf16 %v68_v7, %v62_v8 }
  0x18   :  { %81 = vst [vmem:[%s102_s1] sm:$0xff] %v80_v9  }

// kernel: city_general_forward.1
= control target key start
LH: loop header
LB: loop body
LE: loop exit
PB: predicated region body
PF: predicated region fallthrough
CT: control target
= control target key end

     0   :  { %s2396_s30 = smov 0   ;;  %s3120_s0 = inlined_call_operand.vmem [shape: f32[2,8,256], index: 0, kind: input, shape index: {}]   ;;  %s3121_s1 = inlined_call_operand.vmem [shape: f32[16,72], index: 1, kind: input, shape index: {}]   ;;  %s3122_s2 = inlined_call_operand.vmem [shape: f32[16,256], index: 2, kind: input, shape index: {}]   ;;  %s3123_s3 = inlined_call_operand.vmem [shape: f32[16,144], index: 3, kind: input, shape index: {}]   ;;  %s3124_s4 = inlined_call_operand.vmem [shape: f32[16,1], index: 4, kind: input, shape index: {}]   ;;  %s3125_s5 = inlined_call_operand.vmem [shape: f32[16,144], index: 5, kind: input, shape index: {}]   ;;  %s3126_s6 = inlined_call_operand.vmem [shape: f32[16,1], index: 6, kind: input, shape index: {}]   ;;  %s3127_s7 = inlined_call_operand.vmem [shape: f32[4,144], index: 7, kind: input, shape index: {}]   ;;  %s3128_s8 = inlined_call_operand.vmem [shape: f32[4,1], index: 8, kind: input, shape index: {}]   ;;  %s3129_s9 = inlined_call_operand.vmem [shape: f32[2,4,256], index: 9, kind: output, shape index: {}]  }
   0x1 LB: > { %s1831_s10 = sadd.s32 4294967295, %s2328_s30   ;;  %p1835_p0 = scmp.ge.s32.totalorder %s2328_s30, 1  ;;  %s2328_s30 = sphi %s2396_s30, %s19_s30  }
   0x2   : > { %p287_p1 = scmp.lt.s32.totalorder %s2328_s30, 3 }
   0x4   : > { %p288_p2 = pnand %p1835_p0, %p287_p1 }
   0x5   : > { %p323_p3 = scmp.lt.s32.totalorder (!%p288_p2), %s1831_s10, 1  ;;  %s2330_s15 = smov (!%p288_p2), 17  }
   0x6   : > { %291 = sbr.rel (%p288_p2) target bundleno = 1784 (0x6f8), region = 56  ;;  %s2332_s16 = smov (!%p288_p2), 34  }
   0x7   : > { %s2333_s17 = smov (!%p288_p2), 18   ;;  %s2334_s18 = smov (!%p288_p2), 32  }
   0x8   : > { %s2335_s19 = smov (!%p288_p2), 16   ;;  %s2336_s20 = smov (!%p288_p2), 2  }
   0x9   : > { %s2337_s21 = smov (!%p288_p2), 95   ;;  %s2338_s22 = smov (!%p288_p2), 94  }
   0xa   : > { %s2339_s23 = smov (!%p288_p2), 111   ;;  %s2340_s24 = smov (!%p288_p2), 110  }
   0xb   : > { %v333_v0 = vlaneseq  ;;  %s3133_s10 = smov (!%p323_p3, %s1831_s10), 1  ;;  %v2331_v6 = vmov 0.0   ;;  %vm380_vm4 = vcmask 138240   ;;  %vm445_vm5 = vcmask 277504   ;;  %s2341_s25 = smov 96  }
   0xc   : > { %s1860_s11 = sshll.u32 %s3133_s10, 4  ;;  %vm433_vm6 = vcmask 261120   ;;  %vm421_vm7 = vcmask 146432   ;;  %vm409_vm8 = vcmask 130048   ;;  %vm395_vm9 = vcmask 15360   ;;  %s2342_s26 = smov 112  }
   0xd   : > { %v334_v1 = vand.u32 127, %v333_v0  ;;  %s327_s14 = scalar_lea.vmem %s3120_s0, %s1860_s11  ;;  %s2343_s27 = smov 126   ;;  %vm553_vm10 = vcmask 769024   ;;  %vm539_vm11 = vcmask 777216   ;;  %vm528_vm12 = vcmask 785408  }
   0xe   : > { %v372_v4 = vld [vmem:[%s327_s14] sm:$0xff]  ;;  %v373_v10 = vld [vmem:[%s327_s14 + $0x8] sm:$0xff]  ;;  %s2344_s28 = smov 127   ;;  %vm514_vm13 = vcmask 900096   ;;  %vm500_vm14 = vcmask 908288   ;;  %vm489_vm15 = vcmask 916480  }
   0xf   : > { %v335_v2 = vadd.s32 128, %v334_v1  ;;  %v340_v3 = vand.u32 15, %v334_v1  ;;  %376 = vrot.lane.b32.xlu0 %v372_v4, %s2330_s15 }
  0x11   : > { %v347_v5 = vand.u32 15, %v335_v2  ;;  %vm366_vm0 = vcmp.ne.s32.totalorder %v340_v3, 15  ;;  %vm360_vm2 = vcmp.ne.s32.totalorder %v340_v3, 0 }
  0x12   : > { %v1842_v7 = vsel %vm366_vm0, 1.0, %v2331_v6  ;;  %v2411_v11 = vsel %vm360_vm2, 1.0, %v2331_v6  ;;  %vm475_vm0 = vcmask 1031168   ;;  %vm564_vm2 = vcmask 588800  }
  0x13   : > { %vm367_vm1 = vcmp.ne.s32.totalorder %v347_v5, 15  ;;  %vm361_vm3 = vcmp.ne.s32.totalorder %v347_v5, 0 }
  0x14   : > { %v1843_v8 = vsel %vm367_vm1, 1.0, %v2331_v6  ;;  %v2413_v12 = vsel %vm361_vm3, 1.0, %v2331_v6  ;;  %vm461_vm1 = vcmask 1039360  }
  0x15   : > { %v1886_v9 = vpack.i.bf16 %v1843_v8, %v1842_v7  ;;  %v1891_v13 = vpack.i.bf16 %v2413_v12, %v2411_v11 }
  0x17   : > { %1887 = vrot.lane.b32.xlu1 %v1886_v9, %s2332_s16  ;;  %1897 = vrot.lane.b32.xlu2 %v1886_v9, %s2333_s17 }
  0x18   : > { %378 = vrot.lane.b32.xlu0 %v373_v10, %s2330_s15 }
  0x1f   : > { %1892 = vrot.lane.b32.xlu1 %v1891_v13, %s2334_s18  ;;  %1902 = vrot.lane.b32.xlu2 %v1891_v13, %s2335_s19 }
  0x20   : > { %1907 = vrot.lane.b32.xlu0 %v1886_v9, %s2336_s20 }
  0x71   : > { %v1898_v23 = vpop.permute.xlu2 %1897 }
  0x72   : > { %v2439_v26 = vunpack.i.h.bf16 %v1898_v23  ;;  %v2467_v37 = vunpack.i.l.bf16 %v1898_v23 }
  0x74   : > { %v2475_v41 = vsel %vm421_vm7, %v2467_v37, %v2439_v26 }
  0x79   : > { %v1903_v33 = vpop.permute.xlu2 %1902 }
  0x7a   : > { %v2469_v38 = vunpack.i.h.bf16 %v1903_v33  ;;  %v2471_v40 = vunpack.i.l.bf16 %v1903_v33 }
  0x7c   : > { %v2483_v45 = vsel %vm409_vm8, %v2471_v40, %v2469_v38 }
  0x81   : > { %v377_v14 = vpop.permute.xlu0 %376 }
  0x82   : > { %v2421_v18 = vsel %vm380_vm4, 0.0, %v377_v14 }
  0x83   : > { %v426_v49 = vmul.f32 %v2467_v37, %v2421_v18  ;;  %v414_v52 = vmul.f32 %v2471_v40, %v2421_v18 }
  0x89   : > { %v1888_v15 = vpop.permute.xlu1 %1887 }
  0x8a   : > { %v2418_v16 = vunpack.i.h.bf16 %v1888_v15  ;;  %v379_v17 = vpop.permute.xlu0 %378  ;;  %v2437_v24 = vunpack.i.l.bf16 %v1888_v15 }
  0x8b   : > { %v2424_v19 = vsel %vm380_vm4, %v377_v14, %v379_v17  ;;  %v2427_v20 = vsel %vm380_vm4, %v379_v17, 0.0 }
  0x8c   : > { %537 = vrot.lane.b32.xlu1 %v2427_v20, %s2337_s21  ;;  %v452_v21 = vmul.f32 %v2418_v16, %v2427_v20  ;;  %v1911_v22 = vpack.i.bf16 %v2424_v19, %v2421_v18  ;;  %v2447_v29 = vsel %vm445_vm5, %v2437_v24, %v2418_v16  ;;  %v428_v30 = vmul.f32 %v2439_v26, %v2427_v20 }
  0x8d   : > { %v451_v32 = vmul.f32 %v2447_v29, %v2424_v19  ;;  %v450_v34 = vmul.f32 %v2437_v24, %v2421_v18  ;;  %v427_v46 = vmul.f32 %v2475_v41, %v2424_v19  ;;  %v415_v50 = vmul.f32 %v2483_v45, %v2424_v19 }
  0x8e   : > { %551 = vrot.lane.b32.xlu2 %v452_v21, %s2338_s22  ;;  %1912 = vrot.lane.b32.xlu0 %v1911_v22, %s2337_s21  ;;  %v416_v54 = vmul.f32 %v2469_v38, %v2427_v20 }
  0x8f   : > { %v1921_v39 = vpack.i.bf16 %v451_v32, %v450_v34  ;;  %v1931_v51 = vpack.i.bf16 %v427_v46, %v426_v49  ;;  %v1936_v55 = vpack.i.bf16 %v415_v50, %v414_v52 }
  0x91   : > { %v1893_v25 = vpop.permute.xlu1 %1892 }
  0x92   : > { %v2441_v27 = vunpack.i.h.bf16 %v1893_v25  ;;  %v2443_v28 = vunpack.i.l.bf16 %v1893_v25  ;;  %v1908_v42 = vpop.permute.xlu0 %1907 }
  0x93   : > { %v2489_v47 = vunpack.i.h.bf16 %v1908_v42  ;;  %v2491_v48 = vunpack.i.l.bf16 %v1908_v42 }
  0x94   : > { %498 = vrot.lane.b32.xlu1 %v2427_v20, %s2339_s23  ;;  %v2455_v31 = vsel %vm433_vm6, %v2443_v28, %v2441_v27  ;;  %v438_v35 = vmul.f32 %v2443_v28, %v2421_v18  ;;  %v440_v43 = vmul.f32 %v2441_v27, %v2427_v20 }
  0x95   : > { %v439_v36 = vmul.f32 %v2455_v31, %v2424_v19  ;;  %v2501_v53 = vsel %vm395_vm9, %v2491_v48, %v2489_v47  ;;  %v400_v56 = vmul.f32 %v2491_v48, %v2421_v18  ;;  %v402_v59 = vmul.f32 %v2489_v47, %v2427_v20 }
  0x96   : > { %512 = vrot.lane.b32.xlu2 %v428_v30, %s2340_s24  ;;  %1917 = vrot.lane.b32.xlu0 %v1911_v22, %s2339_s23  ;;  %v401_v57 = vmul.f32 %v2501_v53, %v2424_v19 }
  0x97   : > { %v1926_v44 = vpack.i.bf16 %v439_v36, %v438_v35 }
  0x98   : > { %v1946_v58 = vpack.i.bf16 %v401_v57, %v400_v56 }
  0x9c   : > { %1922 = vrot.lane.b32.xlu1 %v1921_v39, %s2338_s22 }
  0x9e   : > { %526 = vrot.lane.b32.xlu0 %v440_v43, %s2341_s25  ;;  %1927 = vrot.lane.b32.xlu2 %v1926_v44, %s2341_s25 }
  0xa4   : > { %1932 = vrot.lane.b32.xlu1 %v1931_v51, %s2340_s24 }
  0xa6   : > { %487 = vrot.lane.b32.xlu0 %v416_v54, %s2342_s26  ;;  %1937 = vrot.lane.b32.xlu2 %v1936_v55, %s2342_s26 }
  0xac   : > { %1947 = vrot.lane.b32.xlu1 %v1946_v58, %s2343_s27 }
  0xae   : > { %1942 = vrot.lane.b32.xlu0 %v1911_v22, %s2344_s28  ;;  %473 = vrot.lane.b32.xlu2 %v402_v59, %s2343_s27 }
  0xb4   : > { %459 = vrot.lane.b32.xlu1 %v2427_v20, %s2344_s28 }
  0xe8   : > { %v552_v60 = vpop.permute.xlu2 %551 }
  0xf0   : > { %v513_v63 = vpop.permute.xlu2 %512 }
  0xf8   : > { %v1928_v2 = vpop.permute.xlu2 %1927 }
  0xf9   : > { %v1930_v9 = vunpack.i.h.bf16 %v1928_v2  ;;  %v1929_v10 = vunpack.i.l.bf16 %v1928_v2  ;;  %v560_v2 = vld [vmem:[%s3122_s2] sm:$0xff] }
  0xfb   : > { %v529_v20 = vsel %vm528_vm12, %v1929_v10, %v1930_v9  ;;  %v561_v10 = vld [vmem:[%s3122_s2 + $0x8] sm:$0xff] }
  0xfe   : > { %v538_v61 = vpop.permute.xlu1 %537 }
 0x100   : > { %v1913_v62 = vpop.permute.xlu0 %1912  ;;  %v1938_v22 = vpop.permute.xlu2 %1937 }
 0x101   : > { %v1915_v4 = vunpack.i.h.bf16 %v1913_v62  ;;  %v1914_v5 = vunpack.i.l.bf16 %v1913_v62  ;;  %v1940_v35 = vunpack.i.h.bf16 %v1938_v22  ;;  %v1939_v36 = vunpack.i.l.bf16 %v1938_v22  ;;  %v558_v62 = vld [vmem:[%s3121_s1] sm:$0xff] }
 0x103   : > { %v540_v15 = vsel %vm539_vm11, %v1914_v5, %v1915_v4  ;;  %v541_v17 = vsel %vm539_vm11, %v1915_v4, %v538_v61  ;;  %v490_v46 = vsel %vm489_vm15, %v1939_v36, %v1940_v35  ;;  %v387_v61 = vmul.f32 %v2411_v11, %v2421_v18  ;;  %v559_v18 = vld [vmem:[%s3121_s1 + $0x8] sm:$0xff] }
 0x106   : > { %v499_v0 = vpop.permute.xlu1 %498 }
 0x108   : > { %v1918_v1 = vpop.permute.xlu0 %1917  ;;  %v474_v54 = vpop.permute.xlu2 %473 }
 0x109   : > { %v1920_v25 = vunpack.i.h.bf16 %v1918_v1  ;;  %v1919_v30 = vunpack.i.l.bf16 %v1918_v1  ;;  %v388_v1 = vmul.f32 %v2413_v12, %v2424_v19  ;;  %v562_v19 = vld [vmem:[%s3122_s2 + $0x10] sm:$0xff] }
 0x10b   : > { %v501_v43 = vsel %vm500_vm14, %v1919_v30, %v1920_v25  ;;  %v502_v44 = vsel %vm500_vm14, %v1920_v25, %v499_v0 }
 0x10e   : > { %v1923_v3 = vpop.permute.xlu1 %1922 }
 0x10f   : > { %v1925_v6 = vunpack.i.h.bf16 %v1923_v3  ;;  %v1924_v7 = vunpack.i.l.bf16 %v1923_v3 }
 0x110   : > { %v527_v8 = vpop.permute.xlu0 %526 }
 0x111   : > { %v554_v13 = vsel %vm553_vm10, %v1924_v7, %v1925_v6  ;;  %v555_v14 = vsel %vm553_vm10, %v1925_v6, %v552_v60  ;;  %v530_v21 = vsel %vm528_vm12, %v1930_v9, %v527_v8 }
 0x112   : > { %578 = vmatpush.msra.mxu0 %v554_v13  ;;  %601 = vmatpush.msra.mxu1 %v555_v14  ;;  %v563_v13 = vld [vmem:[%s3122_s2 + $0x18] sm:$0xff] }
 0x114   : > { %579 = vmatpush.msra.mxu0 %v540_v15  ;;  %602 = vmatpush.msra.mxu1 %v541_v17 }
 0x116   : > { %v1933_v23 = vpop.permute.xlu1 %1932  ;;  %580 = vmatpush.msra.mxu0 %v529_v20  ;;  %603 = vmatpush.msra.mxu1 %v530_v21 }
 0x117   : > { %v1935_v32 = vunpack.i.h.bf16 %v1933_v23  ;;  %v1934_v33 = vunpack.i.l.bf16 %v1933_v23 }
 0x118   : > { %v488_v34 = vpop.permute.xlu0 %487 }
 0x119   : > { %v515_v39 = vsel %vm514_vm13, %v1934_v33, %v1935_v32  ;;  %v516_v42 = vsel %vm514_vm13, %v1935_v32, %v513_v63  ;;  %v491_v49 = vsel %vm489_vm15, %v1940_v35, %v488_v34 }
 0x11a   : > { %581 = vmatpush.msra.mxu0 %v515_v39  ;;  %604 = vmatpush.msra.mxu1 %v516_v42 }
 0x11c   : > { %582 = vmatpush.msra.mxu0 %v501_v43  ;;  %605 = vmatpush.msra.mxu1 %v502_v44 }
 0x11e   : > { %583 = vmatpush.msra.mxu0 %v490_v46  ;;  %606 = vmatpush.msra.mxu1 %v491_v49  ;;  %v1948_v50 = vpop.permute.xlu1 %1947 }
 0x11f   : > { %v1950_v51 = vunpack.i.h.bf16 %v1948_v50  ;;  %v1949_v52 = vunpack.i.l.bf16 %v1948_v50 }
 0x120   : > { %v1943_v55 = vpop.permute.xlu0 %1942 }
 0x121   : > { %v1945_v56 = vunpack.i.h.bf16 %v1943_v55  ;;  %v1944_v57 = vunpack.i.l.bf16 %v1943_v55  ;;  %v476_v58 = vsel %vm475_vm0, %v1949_v52, %v1950_v51  ;;  %v477_v59 = vsel %vm475_vm0, %v1950_v51, %v474_v54 }
 0x122   : > { %584 = vmatpush.msra.mxu0 %v476_v58  ;;  %607 = vmatpush.msra.mxu1 %v477_v59 }
 0x123   : > { %v462_v60 = vsel %vm461_vm1, %v1944_v57, %v1945_v56 }
 0x124   : > { %585 = vmatpush.msra.mxu0 %v462_v60 }
 0x126   : > { %v460_v63 = vpop.permute.xlu1 %459  ;;  %586 = vmatpush.msra.mxu0 %v387_v61 }
 0x127   : > { %1844 = vmatmul.msk.f32.vlgmr.msra.gmra.mxu0 %vm564_vm2, %v558_v62  ;;  %v463_v0 = vsel %vm461_vm1, %v1945_v56, %v460_v63 }
 0x128   : > { %608 = vmatpush.msra.mxu1 %v463_v0 }
 0x12a   : > { %609 = vmatpush.msra.mxu1 %v388_v1 }
 0x12b   : > { %1846 = vmatmul.msk.f32.vlgmr.msra.gmra.mxu1 %vm564_vm2, %v558_v62 }
 0x12f   : > { %1845 = vmatmul.msk.f32.gmra.mxu0 %vm564_vm2, %v559_v18 }
 0x133   : > { %1847 = vmatmul.msk.f32.gmra.mxu1 %vm564_vm2, %v559_v18 }
 0x1a4   : > { %v588_v3 = vpop.f32.mrf.mxu0 }
 0x1a5   : > { %v589_v4 = vadd.f32 %v588_v3, %v560_v2 }
 0x1a7   : > { %v621_v5 = vmul.f32 0.01, %v589_v4  ;;  %vm617_vm3 = vcmp.gt.f32.partialorder %v589_v4, 0.0 }
 0x1a8   : > { %v611_v6 = vpop.f32.mrf.mxu1 }
 0x1a9   : > { %v625_v7 = vsel %vm617_vm3, %v589_v4, %v621_v5  ;;  %v612_v17 = vadd.f32 %v611_v6, %v561_v10 }
 0x1aa   : > { %633 = vrot.lane.b32.xlu1 %v625_v7, %s2330_s15 }
 0x1ab   : > { %v622_v23 = vmul.f32 0.01, %v612_v17  ;;  %vm618_vm7 = vcmp.gt.f32.partialorder %v612_v17, 0.0 }
 0x1ac   : > { %v591_v8 = vpop.f32.mrf.mxu0 }
 0x1ad   : > { %v592_v9 = vadd.f32 %v591_v8, %v562_v19  ;;  %v626_v30 = vsel %vm618_vm7, %v612_v17, %v622_v23 }
 0x1af   : > { %v623_v14 = vmul.f32 0.01, %v592_v9  ;;  %vm619_vm5 = vcmp.gt.f32.partialorder %v592_v9, 0.0 }
 0x1b0   : > { %v614_v15 = vpop.f32.mrf.mxu1 }
 0x1b1   : > { %v615_v20 = vadd.f32 %v614_v15, %v563_v13  ;;  %v627_v21 = vsel %vm619_vm5, %v592_v9, %v623_v14 }
 0x1b2   : > { %637 = vrot.lane.b32.xlu2 %v627_v21, %s2330_s15 }
 0x1b3   : > { %v624_v22 = vmul.f32 0.01, %v615_v20  ;;  %vm620_vm6 = vcmp.gt.f32.partialorder %v615_v20, 0.0 }
 0x1b5   : > { %v628_v25 = vsel %vm620_vm6, %v615_v20, %v624_v22 }
 0x1b6   : > { %639 = vrot.lane.b32.xlu0 %v628_v25, %s2330_s15 }
 0x1ba   : > { %635 = vrot.lane.b32.xlu2 %v626_v30, %s2330_s15 }
 0x20c   : > { %v638_v32 = vpop.permute.xlu2 %637 }
 0x20d   : > { %v2589_v54 = vsel %vm380_vm4, 0.0, %v638_v32 }
 0x20e   : > { %v684_v63 = vmul.f32 %v2437_v24, %v2589_v54  ;;  %v678_v2 = vmul.f32 %v2443_v28, %v2589_v54  ;;  %v666_v7 = vmul.f32 %v2471_v40, %v2589_v54  ;;  %v672_v10 = vmul.f32 %v2467_v37, %v2589_v54 }
 0x20f   : > { %v660_v20 = vmul.f32 %v2491_v48, %v2589_v54 }
 0x214   : > { %v636_v33 = vpop.permute.xlu2 %635 }
 0x215   : > { %v2562_v35 = vsel %vm380_vm4, %v636_v33, 0.0 }
 0x216   : > { %v677_v50 = vmul.f32 %v2441_v27, %v2562_v35  ;;  %v671_v60 = vmul.f32 %v2439_v26, %v2562_v35  ;;  %v665_v30 = vmul.f32 %v2469_v38, %v2562_v35 }
 0x21c   : > { %v634_v34 = vpop.permute.xlu1 %633 }
 0x21d   : > { %v2565_v36 = vsel %vm380_vm4, %v634_v34, %v636_v33  ;;  %v2568_v39 = vsel %vm380_vm4, 0.0, %v634_v34 }
 0x21e   : > { %v2572_v42 = vpack.i.bf16 %v2562_v35, %v2565_v36  ;;  %v681_v43 = vmul.f32 %v2437_v24, %v2568_v39  ;;  %v682_v44 = vmul.f32 %v2565_v36, %v2447_v29  ;;  %v676_v49 = vmul.f32 %v2565_v36, %v2455_v31 }
 0x21f   : > { %v670_v59 = vmul.f32 %v2565_v36, %v2475_v41  ;;  %v675_v3 = vmul.f32 %v2443_v28, %v2568_v39  ;;  %v669_v13 = vmul.f32 %v2467_v37, %v2568_v39  ;;  %v664_v23 = vmul.f32 %v2565_v36, %v2483_v45 }
 0x220   : > { %1957 = vrot.lane.b32.xlu0 %v2572_v42, %s2339_s23  ;;  %1952 = vrot.lane.b32.xlu2 %v2572_v42, %s2337_s21  ;;  %v1971_v46 = vpack.i.bf16 %v682_v44, %v681_v43  ;;  %v1961_v51 = vpack.i.bf16 %v677_v50, %v676_v49  ;;  %v663_v25 = vmul.f32 %v2471_v40, %v2568_v39 }
 0x221   : > { %v1966_v61 = vpack.i.bf16 %v671_v60, %v670_v59  ;;  %v2016_v33 = vpack.i.bf16 %v665_v30, %v664_v23  ;;  %v658_v43 = vmul.f32 %v2565_v36, %v2501_v53  ;;  %v657_v44 = vmul.f32 %v2491_v48, %v2568_v39 }
 0x222   : > { %1972 = vrot.lane.b32.xlu1 %v1971_v46, %s2338_s22  ;;  %v659_v46 = vmul.f32 %v2489_v47, %v2562_v35 }
 0x224   : > { %v2021_v50 = vpack.i.bf16 %v659_v46, %v658_v43 }
 0x228   : > { %v640_v52 = vpop.permute.xlu0 %639  ;;  %1962 = vrot.lane.b32.xlu2 %v1961_v51, %s2341_s25 }
 0x229   : > { %v2592_v55 = vsel %vm380_vm4, %v638_v32, %v640_v52  ;;  %v652_v56 = vsel %vm380_vm4, %v640_v52, 0.0  ;;  %v683_v52 = vmul.f32 %v2418_v16, %v2562_v35 }
 0x22a   : > { %v1976_v57 = vpack.i.bf16 %v2592_v55, %v2589_v54  ;;  %v1981_v58 = vpack.i.bf16 %v2568_v39, %v652_v56  ;;  %v685_v62 = vmul.f32 %v2592_v55, %v2447_v29  ;;  %v679_v1 = vmul.f32 %v2592_v55, %v2455_v31 }
 0x22b   : > { %v680_v18 = vmul.f32 %v2441_v27, %v652_v56  ;;  %v667_v6 = vmul.f32 %v2592_v55, %v2483_v45  ;;  %v673_v8 = vmul.f32 %v2592_v55, %v2475_v41  ;;  %v674_v9 = vmul.f32 %v2439_v26, %v652_v56 }
 0x22c   : > { %1977 = vrot.lane.b32.xlu0 %v1976_v57, %s2337_s21  ;;  %1982 = vrot.lane.b32.xlu1 %v1981_v58, %s2337_s21  ;;  %v2026_v0 = vpack.i.bf16 %v685_v62, %v684_v63  ;;  %v1996_v4 = vpack.i.bf16 %v679_v1, %v678_v2  ;;  %v661_v17 = vmul.f32 %v2592_v55, %v2501_v53 }
 0x22d   : > { %v2001_v5 = vpack.i.bf16 %v675_v3, %v680_v18  ;;  %v2031_v19 = vpack.i.bf16 %v667_v6, %v666_v7  ;;  %v2006_v14 = vpack.i.bf16 %v673_v8, %v672_v10  ;;  %v2011_v15 = vpack.i.bf16 %v669_v13, %v674_v9 }
 0x22e   : > { %v2041_v21 = vpack.i.bf16 %v661_v17, %v660_v20  ;;  %v668_v22 = vmul.f32 %v2469_v38, %v652_v56  ;;  %v662_v34 = vmul.f32 %v2489_v47, %v652_v56  ;;  %v686_v51 = vmul.f32 %v2418_v16, %v652_v56 }
 0x230   : > { %1967 = vrot.lane.b32.xlu2 %v1966_v61, %s2340_s24  ;;  %v2036_v32 = vpack.i.bf16 %v663_v25, %v668_v22  ;;  %v2051_v49 = vpack.i.bf16 %v657_v44, %v662_v34  ;;  %v2066_v59 = vpack.i.bf16 %v683_v52, %v686_v51  ;;  %v882_v22 = vld [vmem:[%s3123_s3 + $0x8] sm:$0xff] }
 0x234   : > { %1987 = vrot.lane.b32.xlu0 %v1976_v57, %s2339_s23  ;;  %1992 = vrot.lane.b32.xlu1 %v1981_v58, %s2339_s23 }
 0x238   : > { %2027 = vrot.lane.b32.xlu2 %v2026_v0, %s2338_s22 }
 0x23c   : > { %1997 = vrot.lane.b32.xlu0 %v1996_v4, %s2341_s25  ;;  %2002 = vrot.lane.b32.xlu1 %v2001_v5, %s2341_s25 }
 0x240   : > { %2032 = vrot.lane.b32.xlu2 %v2031_v19, %s2342_s26 }
 0x244   : > { %2007 = vrot.lane.b32.xlu0 %v2006_v14, %s2340_s24  ;;  %2012 = vrot.lane.b32.xlu1 %v2011_v15, %s2340_s24 }
 0x248   : > { %2042 = vrot.lane.b32.xlu2 %v2041_v21, %s2343_s27 }
 0x24c   : > { %2037 = vrot.lane.b32.xlu0 %v2036_v32, %s2342_s26  ;;  %2017 = vrot.lane.b32.xlu1 %v2016_v33, %s2342_s26 }
 0x250   : > { %2047 = vrot.lane.b32.xlu2 %v1976_v57, %s2344_s28 }
 0x254   : > { %2052 = vrot.lane.b32.xlu0 %v2051_v49, %s2343_s27  ;;  %2022 = vrot.lane.b32.xlu1 %v2021_v50, %s2343_s27  ;;  %v884_v49 = vld [vmem:[%s3123_s3 + $0x18] sm:$0xff] }
 0x258   : > { %2067 = vrot.lane.b32.xlu2 %v2066_v59, %s2338_s22 }
 0x25c   : > { %2057 = vrot.lane.b32.xlu0 %v1981_v58, %s2344_s28  ;;  %2062 = vrot.lane.b32.xlu1 %v2572_v42, %s2344_s28 }
 0x27a   : > { %v1953_v57 = vpop.permute.xlu2 %1952 }
 0x27b   : > { %v1955_v42 = vunpack.i.h.bf16 %v1953_v57  ;;  %v1954_v4 = vunpack.i.l.bf16 %v1953_v57 }
 0x27d   : > { %v848_v17 = vsel %vm539_vm11, %v1954_v4, %v1955_v42 }
 0x282   : > { %v1963_v60 = vpop.permute.xlu2 %1962 }
 0x283   : > { %v1965_v25 = vunpack.i.h.bf16 %v1963_v60  ;;  %v1964_v30 = vunpack.i.l.bf16 %v1963_v60 }
 0x28a   : > { %v2666_v61 = vpop.permute.xlu2 %1967 }
 0x292   : > { %v2028_v56 = vpop.permute.xlu2 %2027  ;;  %v2669_v2 = vpop.permute.xlu0 %1957 }
 0x293   : > { %v2030_v62 = vunpack.i.h.bf16 %v2028_v56  ;;  %v2029_v63 = vunpack.i.l.bf16 %v2028_v56  ;;  %v828_v56 = vsel %vm528_vm12, %v1964_v30, %v1965_v25 }
 0x294   : > { %v1973_v0 = vpop.permute.xlu1 %1972 }
 0x295   : > { %v1975_v1 = vunpack.i.h.bf16 %v1973_v0  ;;  %v1974_v18 = vunpack.i.l.bf16 %v1973_v0  ;;  %v875_v35 = vsel %vm553_vm10, %v2029_v63, %v2030_v62  ;;  %v1970_v0 = vunpack.i.h.bf16 %v2666_v61 }
 0x296   : > { %940 = vmatpush.msra.mxu3 %v875_v35 }
 0x297   : > { %v873_v58 = vsel %vm553_vm10, %v1974_v18, %v1975_v1  ;;  %v1969_v18 = vunpack.i.l.bf16 %v2666_v61  ;;  %v1960_v61 = vunpack.i.h.bf16 %v2669_v2 }
 0x298   : > { %941 = vmatpush.msra.mxu3 %v873_v58 }
 0x299   : > { %1848 = vmatmul.msk.f32.vlgmr.msra.gmra.mxu3 %vm409_vm8, %v882_v22 }
 0x29a   : > { %v2672_v3 = vpop.permute.xlu2 %2032 }
 0x29b   : > { %v2034_v25 = vunpack.i.l.bf16 %v2672_v3 }
 0x29e   : > { %v1978_v5 = vpop.permute.xlu0 %1977  ;;  %v1983_v6 = vpop.permute.xlu1 %1982 }
 0x29f   : > { %v1980_v7 = vunpack.i.h.bf16 %v1978_v5  ;;  %v1979_v19 = vunpack.i.l.bf16 %v1978_v5  ;;  %v1985_v8 = vunpack.i.h.bf16 %v1983_v6  ;;  %v1984_v9 = vunpack.i.l.bf16 %v1983_v6 }
 0x2a1   : > { %v849_v10 = vsel %vm539_vm11, %v1979_v19, %v1980_v7  ;;  %v850_v13 = vsel %vm539_vm11, %v1980_v7, %v1984_v9  ;;  %v847_v15 = vsel %vm539_vm11, %v1985_v8, %v1954_v4  ;;  %1849 = vmatmul.msk.f32.gmra.mxu3 %vm409_vm8, %v884_v49 }
 0x2a2   : > { %903 = vmatpush.msra.mxu2 %v849_v10  ;;  %v2676_v14 = vpop.permute.xlu2 %2042  ;;  %949 = vmatpush.msrb.mxu3 %v850_v13  ;;  %v1959_v13 = vunpack.i.l.bf16 %v2669_v2 }
 0x2a4   : > { %904 = vmatpush.msra.mxu2 %v847_v15  ;;  %950 = vmatpush.msrb.mxu3 %v848_v17  ;;  %v802_v17 = vsel %vm514_vm13, %v1969_v18, %v1970_v0 }
 0x2a6   : > { %v1988_v20 = vpop.permute.xlu0 %1987  ;;  %v1993_v21 = vpop.permute.xlu1 %1992 }
 0x2a7   : > { %v1990_v19 = vunpack.i.h.bf16 %v1988_v20  ;;  %v1989_v8 = vunpack.i.l.bf16 %v1988_v20  ;;  %v1994_v9 = vunpack.i.l.bf16 %v1993_v21  ;;  %v1995_v15 = vunpack.i.h.bf16 %v1993_v21 }
 0x2a8   : > { %v2035_v20 = vunpack.i.h.bf16 %v2672_v3 }
 0x2a9   : > { %v775_v21 = vsel %vm500_vm14, %v1995_v15, %v1959_v13 }
 0x2aa   : > { %v2684_v23 = vpop.permute.xlu2 %2047  ;;  %v757_v3 = vsel %vm489_vm15, %v2034_v25, %v2035_v20  ;;  %v653_v25 = vmul.f32 %v2411_v11, %v2568_v39 }
 0x2ab   : > { %v2049_v0 = vunpack.i.l.bf16 %v2684_v23 }
 0x2ae   : > { %v1998_v32 = vpop.permute.xlu0 %1997  ;;  %v2003_v33 = vpop.permute.xlu1 %2002 }
 0x2af   : > { %v2000_v34 = vunpack.i.h.bf16 %v1998_v32  ;;  %v1999_v43 = vunpack.i.l.bf16 %v1998_v32  ;;  %v2005_v44 = vunpack.i.h.bf16 %v2003_v33  ;;  %v2004_v46 = vunpack.i.l.bf16 %v2003_v33 }
 0x2b0   : > { %v776_v33 = vsel %vm500_vm14, %v1959_v13, %v1960_v61 }
 0x2b1   : > { %v829_v50 = vsel %vm528_vm12, %v1999_v43, %v2000_v34  ;;  %v830_v51 = vsel %vm528_vm12, %v2000_v34, %v2004_v46  ;;  %v827_v60 = vsel %vm528_vm12, %v2005_v44, %v1964_v30  ;;  %v777_v30 = vsel %vm500_vm14, %v1989_v8, %v1990_v19 }
 0x2b2   : > { %905 = vmatpush.msra.mxu2 %v829_v50  ;;  %v2068_v52 = vpop.permute.xlu2 %2067  ;;  %951 = vmatpush.msrb.mxu3 %v830_v51  ;;  %v2045_v50 = vunpack.i.h.bf16 %v2676_v14  ;;  %v2044_v51 = vunpack.i.l.bf16 %v2676_v14 }
 0x2b3   : > { %v2070_v59 = vunpack.i.h.bf16 %v2068_v52  ;;  %v2069_v57 = vunpack.i.l.bf16 %v2068_v52 }
 0x2b4   : > { %906 = vmatpush.msra.mxu2 %v827_v60  ;;  %952 = vmatpush.msrb.mxu3 %v828_v56  ;;  %v731_v14 = vsel %vm475_vm0, %v2044_v51, %v2045_v50 }
 0x2b5   : > { %v876_v63 = vsel %vm553_vm10, %v2030_v62, %v2069_v57  ;;  %v874_v42 = vsel %vm553_vm10, %v1975_v1, %v2070_v59  ;;  %v885_v59 = vld [vmem:[%s3124_s4] sm:$0xff]  ;;  %v886_v57 = vld [vmem:[%s3124_s4 + $0x8] sm:$0xff] }
 0x2b6   : > { %v2008_v35 = vpop.permute.xlu0 %2007  ;;  %v2013_v58 = vpop.permute.xlu1 %2012  ;;  %986 = vmatpush.msrb.mxu0 %v876_v63  ;;  %v2345_v63 = vmov 0  }
 0x2b7   : > { %v2010_v4 = vunpack.i.h.bf16 %v2008_v35  ;;  %v2009_v5 = vunpack.i.l.bf16 %v2008_v35  ;;  %v2015_v6 = vunpack.i.h.bf16 %v2013_v58  ;;  %v2014_v7 = vunpack.i.l.bf16 %v2013_v58  ;;  %2072 = vset.pattern.permute.xlu1 %v2345_v63  ;;  %2071 = vset.pattern.permute.xlu0 %v2345_v63 }
 0x2b8   : > { %987 = vmatpush.msrb.mxu0 %v874_v42  ;;  %889 = vperm.xlu1 %2072, %v885_v59  }
 0x2b9   : > { %v803_v10 = vsel %vm514_vm13, %v2009_v5, %v2010_v4  ;;  %v804_v62 = vsel %vm514_vm13, %v2010_v4, %v2014_v7  ;;  %1850 = vmatmul.msk.f32.vlgmr.msrb.gmra.mxu0 %vm409_vm8, %v882_v22  ;;  %v801_v1 = vsel %vm514_vm13, %v2015_v6, %v1969_v18  ;;  %v778_v22 = vsel %vm500_vm14, %v1990_v19, %v1994_v9 }
 0x2ba   : > { %907 = vmatpush.msra.mxu2 %v803_v10  ;;  %953 = vmatpush.msrb.mxu3 %v804_v62 }
 0x2bb   : > { %894 = vperm.xlu0 %2071, %v886_v57   ;;  %2193 = vset.pattern.permute.xlu2 %v2345_v63 }
 0x2bc   : > { %908 = vmatpush.msra.mxu2 %v801_v1  ;;  %954 = vmatpush.msrb.mxu3 %v802_v17  ;;  %v655_v17 = vmul.f32 %v2411_v11, %v2589_v54  ;;  %v883_v54 = vld [vmem:[%s3123_s3 + $0x10] sm:$0xff] }
 0x2be   : > { %v2038_v32 = vpop.permute.xlu0 %2037  ;;  %909 = vmatpush.msra.mxu2 %v777_v30  ;;  %955 = vmatpush.msrb.mxu3 %v778_v22  ;;  %v2018_v2 = vpop.permute.xlu1 %2017  ;;  %v656_v30 = vmul.f32 %v2413_v12, %v2592_v55  ;;  %v881_v22 = vld [vmem:[%s3123_s3] sm:$0xff] }
 0x2bf   : > { %v2040_v34 = vunpack.i.h.bf16 %v2038_v32  ;;  %v2039_v43 = vunpack.i.l.bf16 %v2038_v32  ;;  %v2020_v44 = vunpack.i.h.bf16 %v2018_v2  ;;  %v2019_v46 = vunpack.i.l.bf16 %v2018_v2 }
 0x2c0   : > { %910 = vmatpush.msra.mxu2 %v775_v21  ;;  %956 = vmatpush.msrb.mxu3 %v776_v33  ;;  %v654_v32 = vmul.f32 %v2413_v12, %v2565_v36 }
 0x2c1   : > { %v758_v52 = vsel %vm489_vm15, %v2035_v20, %v2039_v43  ;;  %1851 = vmatmul.msk.f32.gmra.mxu0 %vm409_vm8, %v884_v49  ;;  %v755_v60 = vsel %vm489_vm15, %v2040_v34, %v2019_v46  ;;  %v756_v56 = vsel %vm489_vm15, %v2019_v46, %v2020_v44  ;;  %v2050_v49 = vunpack.i.h.bf16 %v2684_v23 }
 0x2c2   : > { %911 = vmatpush.msra.mxu2 %v757_v3  ;;  %957 = vmatpush.msrb.mxu3 %v758_v52 }
 0x2c3   : > { %v705_v19 = vsel %vm461_vm1, %v2049_v0, %v2050_v49 }
 0x2c4   : > { %912 = vmatpush.msra.mxu2 %v755_v60  ;;  %958 = vmatpush.msrb.mxu3 %v756_v56 }
 0x2c6   : > { %v2053_v18 = vpop.permute.xlu0 %2052  ;;  %913 = vmatpush.msra.mxu2 %v731_v14  ;;  %v2023_v35 = vpop.permute.xlu1 %2022 }
 0x2c7   : > { %v2055_v58 = vunpack.i.h.bf16 %v2053_v18  ;;  %v2054_v42 = vunpack.i.l.bf16 %v2053_v18  ;;  %v2025_v4 = vunpack.i.h.bf16 %v2023_v35  ;;  %v2024_v5 = vunpack.i.l.bf16 %v2023_v35 }
 0x2c9   : > { %v729_v6 = vsel %vm475_vm0, %v2055_v58, %v2024_v5  ;;  %v732_v7 = vsel %vm475_vm0, %v2045_v50, %v2054_v42  ;;  %v730_v8 = vsel %vm475_vm0, %v2024_v5, %v2025_v4 }
 0x2ca   : > { %914 = vmatpush.msra.mxu2 %v729_v6  ;;  %959 = vmatpush.msrb.mxu3 %v732_v7 }
 0x2cc   : > { %915 = vmatpush.msra.mxu2 %v705_v19  ;;  %960 = vmatpush.msrb.mxu3 %v730_v8 }
 0x2ce   : > { %v2058_v23 = vpop.permute.xlu0 %2057  ;;  %v2063_v9 = vpop.permute.xlu1 %2062 }
 0x2cf   : > { %v2060_v10 = vunpack.i.h.bf16 %v2058_v23  ;;  %v2059_v62 = vunpack.i.l.bf16 %v2058_v23  ;;  %v2065_v61 = vunpack.i.h.bf16 %v2063_v9  ;;  %v2064_v13 = vunpack.i.l.bf16 %v2063_v9 }
 0x2d1   : > { %v703_v15 = vsel %vm461_vm1, %v2060_v10, %v2064_v13  ;;  %v706_v1 = vsel %vm461_vm1, %v2050_v49, %v2059_v62  ;;  %v704_v20 = vsel %vm461_vm1, %v2064_v13, %v2065_v61 }
 0x2d2   : > { %916 = vmatpush.msra.mxu2 %v703_v15  ;;  %961 = vmatpush.msrb.mxu3 %v706_v1 }
 0x2d4   : > { %917 = vmatpush.msra.mxu2 %v655_v17  ;;  %962 = vmatpush.msrb.mxu3 %v704_v20 }
 0x2d6   : > { %918 = vmatpush.msra.mxu2 %v653_v25  ;;  %963 = vmatpush.msrb.mxu3 %v656_v30 }
 0x2d7   : > { %919 = vmatmul.f32.vlgmr.msra.gmra.mxu2 %v881_v22 }
 0x2d8   : > { %964 = vmatpush.msrb.mxu3 %v654_v32 }
 0x2d9   : > { %965 = vmatmul.f32.vlgmr.msrb.gmra.mxu3 %v881_v22 }
 0x2df   : > { %922 = vmatmul.f32.gmra.mxu2 %v883_v54 }
 0x2e1   : > { %968 = vmatmul.f32.gmra.mxu3 %v883_v54 }
 0x31c   : > { %v943_v39 = vpop.f32.mrf.mxu3 }
 0x324   : > { %v946_v55 = vpop.f32.mrf.mxu3 }
 0x32a   : > { %v890_v33 = vpop.permute.xlu1 %889 }
 0x32d   : > { %v895_v46 = vpop.permute.xlu0 %894 }
 0x336   : > { %v989_v21 = vpop.f32.mrf.mxu0 }
 0x33e   : > { %v992_v59 = vpop.f32.mrf.mxu0 }
 0x35a   : > { %v920_v2 = vpop.f32.mrf.mxu2 }
 0x35b   : > { %v921_v57 = vadd.f32 %v920_v2, %v890_v33 }
 0x35c   : > { %v966_v34 = vpop.f32.mrf.mxu3 }
 0x35d   : > { %v967_v43 = vadd.f32 %v966_v34, %v890_v33  ;;  %v944_v49 = vadd.f32 %v943_v39, %v921_v57 }
 0x35f   : > { %v990_v44 = vadd.f32 %v989_v21, %v967_v43  ;;  %v999_v58 = vmul.f32 0.01, %v944_v49  ;;  %vm995_vm5 = vcmp.gt.f32.partialorder %v944_v49, 0.0 }
 0x361   : > { %v1000_v3 = vmul.f32 0.01, %v990_v44  ;;  %vm996_vm9 = vcmp.gt.f32.partialorder %v990_v44, 0.0  ;;  %v1003_v42 = vsel %vm995_vm5, %v944_v49, %v999_v58 }
 0x362   : > { %v923_v36 = vpop.f32.mrf.mxu2 }
 0x363   : > { %v924_v50 = vadd.f32 %v923_v36, %v895_v46  ;;  %v1004_v51 = vsel %vm996_vm9, %v990_v44, %v1000_v3 }
 0x364   : > { %v969_v52 = vpop.f32.mrf.mxu3  ;;  %1013 = vrot.lane.b32.xlu0 %v1004_v51, %s2330_s15 }
 0x365   : > { %v947_v60 = vadd.f32 %v946_v55, %v924_v50  ;;  %v970_v56 = vadd.f32 %v969_v52, %v895_v46 }
 0x367   : > { %v993_v63 = vadd.f32 %v992_v59, %v970_v56  ;;  %vm997_vm2 = vcmp.gt.f32.partialorder %v947_v60, 0.0  ;;  %v1001_v14 = vmul.f32 0.01, %v947_v60 }
 0x369   : > { %v1002_v0 = vmul.f32 0.01, %v993_v63  ;;  %v1005_v18 = vsel %vm997_vm2, %v947_v60, %v1001_v14  ;;  %vm998_vm3 = vcmp.gt.f32.partialorder %v993_v63, 0.0 }
 0x36a   : > { %1015 = vrot.lane.b32.xlu2 %v1005_v18, %s2330_s15 }
 0x36b   : > { %v1006_v35 = vsel %vm998_vm3, %v993_v63, %v1002_v0 }
 0x36c   : > { %1017 = vrot.lane.b32.xlu1 %v1006_v35, %s2330_s15 }
 0x372   : > { %1011 = vrot.lane.b32.xlu2 %v1003_v42, %s2330_s15 }
 0x3c4   : > { %v1016_v4 = vpop.permute.xlu2 %1015 }
 0x3c5   : > { %v2765_v9 = vsel %vm380_vm4, 0.0, %v1016_v4 }
 0x3c6   : > { %v1056_v21 = vmul.f32 %v2443_v28, %v2765_v9  ;;  %v1050_v51 = vmul.f32 %v2467_v37, %v2765_v9  ;;  %v1044_v49 = vmul.f32 %v2471_v40, %v2765_v9  ;;  %v1062_v0 = vmul.f32 %v2437_v24, %v2765_v9 }
 0x3cc   : > { %v1012_v5 = vpop.permute.xlu2 %1011 }
 0x3cd   : > { %v2768_v10 = vsel %vm380_vm4, 0.0, %v1012_v5 }
 0x3ce   : > { %v1053_v2 = vmul.f32 %v2443_v28, %v2768_v10  ;;  %v1047_v50 = vmul.f32 %v2467_v37, %v2768_v10  ;;  %v1041_v14 = vmul.f32 %v2471_v40, %v2768_v10 }
 0x3d6   : > { %v1014_v6 = vpop.permute.xlu0 %1013 }
 0x3d7   : > { %v2753_v7 = vsel %vm380_vm4, %v1012_v5, %v1014_v6  ;;  %v2756_v19 = vsel %vm380_vm4, %v1014_v6, 0.0 }
 0x3d8   : > { %v2760_v8 = vpack.i.bf16 %v2756_v19, %v2753_v7  ;;  %v1054_v1 = vmul.f32 %v2753_v7, %v2455_v31  ;;  %v1055_v17 = vmul.f32 %v2441_v27, %v2756_v19  ;;  %v1048_v25 = vmul.f32 %v2753_v7, %v2475_v41 }
 0x3d9   : > { %v1049_v30 = vmul.f32 %v2439_v26, %v2756_v19  ;;  %v1042_v39 = vmul.f32 %v2753_v7, %v2483_v45  ;;  %v1043_v55 = vmul.f32 %v2469_v38, %v2756_v19  ;;  %v1036_v3 = vmul.f32 %v2753_v7, %v2501_v53 }
 0x3da   : > { %2074 = vrot.lane.b32.xlu0 %v2760_v8, %s2337_s21  ;;  %v2083_v20 = vpack.i.bf16 %v1055_v17, %v1054_v1  ;;  %v1037_v36 = vmul.f32 %v2489_v47, %v2756_v19  ;;  %v1060_v5 = vmul.f32 %v2753_v7, %v2447_v29  ;;  %v1061_v6 = vmul.f32 %v2418_v16, %v2756_v19 }
 0x3db   : > { %v2088_v22 = vpack.i.bf16 %v1049_v30, %v1048_v25  ;;  %v2093_v43 = vpack.i.bf16 %v1043_v55, %v1042_v39  ;;  %v1059_v19 = vmul.f32 %v2437_v24, %v2768_v10  ;;  %v1264_v30 = vld [vmem:[%s3126_s6 + $0x8] sm:$0xff] }
 0x3dc   : > { %v2098_v57 = vpack.i.bf16 %v1037_v36, %v1036_v3  ;;  %v2188_v17 = vpack.i.bf16 %v1061_v6, %v1060_v5 }
 0x3de   : > { %v1018_v23 = vpop.permute.xlu1 %1017 }
 0x3df   : > { %v2771_v62 = vsel %vm380_vm4, %v1016_v4, %v1018_v23  ;;  %v2774_v61 = vsel %vm380_vm4, %v1018_v23, 0.0  ;;  %v1035_v23 = vmul.f32 %v2491_v48, %v2768_v10 }
 0x3e0   : > { %v2108_v13 = vpack.i.bf16 %v2768_v10, %v2774_v61  ;;  %v2103_v15 = vpack.i.bf16 %v2771_v62, %v2765_v9  ;;  %v1058_v32 = vmul.f32 %v2441_v27, %v2774_v61  ;;  %v1057_v54 = vmul.f32 %v2771_v62, %v2455_v31 }
 0x3e1   : > { %v1052_v44 = vmul.f32 %v2439_v26, %v2774_v61  ;;  %v1051_v46 = vmul.f32 %v2771_v62, %v2475_v41  ;;  %v1046_v60 = vmul.f32 %v2469_v38, %v2774_v61  ;;  %v1045_v56 = vmul.f32 %v2771_v62, %v2483_v45 }
 0x3e2   : > { %2109 = vrot.lane.b32.xlu2 %v2108_v13, %s2337_s21  ;;  %2104 = vrot.lane.b32.xlu1 %v2103_v15, %s2337_s21  ;;  %v2138_v33 = vpack.i.bf16 %v1053_v2, %v1058_v32  ;;  %v2133_v34 = vpack.i.bf16 %v1057_v54, %v1056_v21  ;;  %v1063_v63 = vmul.f32 %v2771_v62, %v2447_v29 }
 0x3e3   : > { %2079 = vrot.lane.b32.xlu0 %v2760_v8, %s2339_s23  ;;  %v2148_v52 = vpack.i.bf16 %v1047_v50, %v1052_v44  ;;  %v2143_v59 = vpack.i.bf16 %v1051_v46, %v1050_v51  ;;  %v2158_v18 = vpack.i.bf16 %v1041_v14, %v1046_v60  ;;  %v2153_v35 = vpack.i.bf16 %v1045_v56, %v1044_v49 }
 0x3e4   : > { %v2173_v58 = vpack.i.bf16 %v1063_v63, %v1062_v0  ;;  %v1040_v42 = vmul.f32 %v2489_v47, %v2774_v61  ;;  %v1039_v4 = vmul.f32 %v2771_v62, %v2501_v53 }
 0x3ea   : > { %2119 = vrot.lane.b32.xlu2 %v2108_v13, %s2339_s23  ;;  %2114 = vrot.lane.b32.xlu1 %v2103_v15, %s2339_s23 }
 0x3eb   : > { %2084 = vrot.lane.b32.xlu0 %v2083_v20, %s2341_s25  ;;  %v1064_v20 = vmul.f32 %v2418_v16, %v2774_v61 }
 0x3ed   : > { %v2178_v25 = vpack.i.bf16 %v1059_v19, %v1064_v20 }
 0x3f2   : > { %2129 = vrot.lane.b32.xlu2 %v2108_v13, %s2344_s28  ;;  %2124 = vrot.lane.b32.xlu1 %v2103_v15, %s2344_s28  ;;  %v1038_v13 = vmul.f32 %v2491_v48, %v2765_v9  ;;  %v2168_v15 = vpack.i.bf16 %v1035_v23, %v1040_v42 }
 0x3f3   : > { %2089 = vrot.lane.b32.xlu0 %v2088_v22, %s2340_s24 }
 0x3f4   : > { %v2163_v1 = vpack.i.bf16 %v1039_v4, %v1038_v13 }
 0x3fa   : > { %2139 = vrot.lane.b32.xlu2 %v2138_v33, %s2341_s25  ;;  %2134 = vrot.lane.b32.xlu1 %v2133_v34, %s2341_s25 }
 0x3fb   : > { %2094 = vrot.lane.b32.xlu0 %v2093_v43, %s2342_s26 }
 0x402   : > { %2149 = vrot.lane.b32.xlu2 %v2148_v52, %s2340_s24  ;;  %2144 = vrot.lane.b32.xlu1 %v2143_v59, %s2340_s24 }
 0x403   : > { %2099 = vrot.lane.b32.xlu0 %v2098_v57, %s2343_s27 }
 0x40a   : > { %2159 = vrot.lane.b32.xlu2 %v2158_v18, %s2342_s26  ;;  %2154 = vrot.lane.b32.xlu1 %v2153_v35, %s2342_s26 }
 0x40b   : > { %2174 = vrot.lane.b32.xlu0 %v2173_v58, %s2338_s22 }
 0x412   : > { %2169 = vrot.lane.b32.xlu2 %v2168_v15, %s2343_s27  ;;  %2164 = vrot.lane.b32.xlu1 %v2163_v1, %s2343_s27 }
 0x413   : > { %2189 = vrot.lane.b32.xlu0 %v2188_v17, %s2338_s22 }
 0x41a   : > { %2179 = vrot.lane.b32.xlu1 %v2178_v25, %s2338_s22  ;;  %2184 = vrot.lane.b32.xlu2 %v2760_v8, %s2344_s28 }
 0x422   : > { %1272 = vperm.xlu1 %2072, %v1264_v30  }
 0x43c   : > { %v2110_v22 = vpop.permute.xlu2 %2109 }
 0x43d   : > { %v2111_v61 = vunpack.i.l.bf16 %v2110_v22  ;;  %v2112_v8 = vunpack.i.h.bf16 %v2110_v22 }
 0x444   : > { %v2868_v32 = vpop.permute.xlu2 %2119 }
 0x44c   : > { %v2075_v54 = vpop.permute.xlu0 %2074  ;;  %v2870_v39 = vpop.permute.xlu2 %2129 }
 0x44d   : > { %v2077_v2 = vunpack.i.h.bf16 %v2075_v54  ;;  %v2076_v21 = vunpack.i.l.bf16 %v2075_v54 }
 0x44f   : > { %v1225_v3 = vsel %vm539_vm11, %v2112_v8, %v2076_v21  ;;  %v1226_v36 = vsel %vm539_vm11, %v2076_v21, %v2077_v2 }
 0x454   : > { %v2105_v55 = vpop.permute.xlu1 %2104  ;;  %v2140_v51 = vpop.permute.xlu2 %2139 }
 0x455   : > { %v2107_v33 = vunpack.i.h.bf16 %v2105_v55  ;;  %v2106_v34 = vunpack.i.l.bf16 %v2105_v55  ;;  %v2872_v43 = vpop.permute.xlu0 %2079  ;;  %v2141_v56 = vunpack.i.l.bf16 %v2140_v51  ;;  %v2142_v58 = vunpack.i.h.bf16 %v2140_v51 }
 0x456   : > { %v2082_v2 = vunpack.i.h.bf16 %v2872_v43  ;;  %v2081_v21 = vunpack.i.l.bf16 %v2872_v43 }
 0x457   : > { %v1227_v44 = vsel %vm539_vm11, %v2106_v34, %v2107_v33  ;;  %v1228_v46 = vsel %vm539_vm11, %v2107_v33, %v2111_v61  ;;  %v2121_v33 = vunpack.i.l.bf16 %v2868_v32 }
 0x458   : > { %1281 = vmatpush.msrb.mxu1 %v1227_v44  ;;  %1327 = vmatpush.msra.mxu0 %v1228_v46  ;;  %v2122_v44 = vunpack.i.h.bf16 %v2868_v32 }
 0x45a   : > { %1282 = vmatpush.msrb.mxu1 %v1225_v3  ;;  %1328 = vmatpush.msra.mxu0 %v1226_v36  ;;  %v1153_v43 = vsel %vm500_vm14, %v2122_v44, %v2081_v21 }
 0x45c   : > { %v2115_v50 = vpop.permute.xlu1 %2114  ;;  %v2150_v60 = vpop.permute.xlu2 %2149 }
 0x45d   : > { %v2085_v52 = vpop.permute.xlu0 %2084  ;;  %v2151_v13 = vunpack.i.l.bf16 %v2150_v60  ;;  %v2152_v30 = vunpack.i.h.bf16 %v2150_v60  ;;  %v2117_v22 = vunpack.i.h.bf16 %v2115_v50  ;;  %v2116_v54 = vunpack.i.l.bf16 %v2115_v50 }
 0x45e   : > { %v2087_v14 = vunpack.i.h.bf16 %v2085_v52  ;;  %v2086_v49 = vunpack.i.l.bf16 %v2085_v52  ;;  %v1154_v52 = vsel %vm500_vm14, %v2081_v21, %v2082_v2  ;;  %v2131_v2 = vunpack.i.l.bf16 %v2870_v39 }
 0x45f   : > { %v1155_v3 = vsel %vm500_vm14, %v2116_v54, %v2117_v22  ;;  %v1156_v36 = vsel %vm500_vm14, %v2117_v22, %v2121_v33 }
 0x460   : > { %v1205_v6 = vsel %vm528_vm12, %v2142_v58, %v2086_v49  ;;  %v1206_v23 = vsel %vm528_vm12, %v2086_v49, %v2087_v14  ;;  %v1263_v14 = vld [vmem:[%s3126_s6] sm:$0xff] }
 0x461   : > { %1267 = vperm.xlu2 %2193, %v1263_v14  }
 0x464   : > { %v2878_v59 = vpop.permute.xlu1 %2124  ;;  %v2160_v5 = vpop.permute.xlu2 %2159 }
 0x465   : > { %v2090_v57 = vpop.permute.xlu0 %2089  ;;  %v2161_v50 = vunpack.i.l.bf16 %v2160_v5 }
 0x466   : > { %v2092_v1 = vunpack.i.h.bf16 %v2090_v57  ;;  %v2091_v17 = vunpack.i.l.bf16 %v2090_v57 }
 0x468   : > { %v1179_v34 = vsel %vm514_vm13, %v2152_v30, %v2091_v17  ;;  %v1180_v8 = vsel %vm514_vm13, %v2091_v17, %v2092_v1  ;;  %v2126_v30 = vunpack.i.l.bf16 %v2878_v59 }
 0x46c   : > { %v2135_v63 = vpop.permute.xlu1 %2134  ;;  %v2170_v46 = vpop.permute.xlu2 %2169 }
 0x46d   : > { %v2137_v0 = vunpack.i.h.bf16 %v2135_v63  ;;  %v2136_v18 = vunpack.i.l.bf16 %v2135_v63  ;;  %v2880_v35 = vpop.permute.xlu0 %2094  ;;  %v2172_v22 = vunpack.i.h.bf16 %v2170_v46 }
 0x46e   : > { %v2097_v57 = vunpack.i.h.bf16 %v2880_v35  ;;  %v2096_v60 = vunpack.i.l.bf16 %v2880_v35 }
 0x46f   : > { %v1207_v42 = vsel %vm528_vm12, %v2136_v18, %v2137_v0  ;;  %v1208_v4 = vsel %vm528_vm12, %v2137_v0, %v2141_v56  ;;  %v2162_v18 = vunpack.i.h.bf16 %v2160_v5 }
 0x470   : > { %1283 = vmatpush.msrb.mxu1 %v1207_v42  ;;  %1329 = vmatpush.msra.mxu0 %v1208_v4 }
 0x471   : > { %v1133_v4 = vsel %vm489_vm15, %v2162_v18, %v2096_v60 }
 0x472   : > { %1284 = vmatpush.msrb.mxu1 %v1205_v6  ;;  %1330 = vmatpush.msra.mxu0 %v1206_v23  ;;  %v1134_v6 = vsel %vm489_vm15, %v2096_v60, %v2097_v57  ;;  %v2171_v23 = vunpack.i.l.bf16 %v2170_v46  ;;  %v1034_v60 = vmul.f32 %v2413_v12, %v2771_v62  ;;  %v1259_v62 = vld [vmem:[%s3125_s5] sm:$0xff] }
 0x474   : > { %v2145_v15 = vpop.permute.xlu1 %2144 }
 0x475   : > { %v2147_v20 = vunpack.i.h.bf16 %v2145_v15  ;;  %v2146_v19 = vunpack.i.l.bf16 %v2145_v15  ;;  %v2886_v25 = vpop.permute.xlu0 %2099  ;;  %v2185_v15 = vpop.permute.xlu2 %2184 }
 0x476   : > { %v2102_v5 = vunpack.i.h.bf16 %v2886_v25  ;;  %v2101_v1 = vunpack.i.l.bf16 %v2886_v25  ;;  %v2187_v21 = vunpack.i.h.bf16 %v2185_v15 }
 0x477   : > { %v1181_v61 = vsel %vm514_vm13, %v2146_v19, %v2147_v20  ;;  %v1182_v55 = vsel %vm514_vm13, %v2147_v20, %v2151_v13  ;;  %v2127_v19 = vunpack.i.h.bf16 %v2878_v59 }
 0x478   : > { %1285 = vmatpush.msrb.mxu1 %v1181_v61  ;;  %1331 = vmatpush.msra.mxu0 %v1182_v55  ;;  %v2186_v55 = vunpack.i.l.bf16 %v2185_v15  ;;  %v1107_v33 = vsel %vm475_vm0, %v2172_v22, %v2101_v1  ;;  %v1108_v25 = vsel %vm475_vm0, %v2101_v1, %v2102_v5 }
 0x479   : > { %v1083_v59 = vsel %vm461_vm1, %v2126_v30, %v2127_v19  ;;  %v1084_v44 = vsel %vm461_vm1, %v2127_v19, %v2131_v2 }
 0x47a   : > { %1286 = vmatpush.msrb.mxu1 %v1179_v34  ;;  %1332 = vmatpush.msra.mxu0 %v1180_v8  ;;  %v2132_v34 = vunpack.i.h.bf16 %v2870_v39  ;;  %v1033_v39 = vmul.f32 %v2411_v11, %v2765_v9  ;;  %v1032_v9 = vmul.f32 %v2413_v12, %v2753_v7  ;;  %v1261_v7 = vld [vmem:[%s3125_s5 + $0x10] sm:$0xff] }
 0x47c   : > { %v2155_v51 = vpop.permute.xlu1 %2154  ;;  %1287 = vmatpush.msrb.mxu1 %v1155_v3  ;;  %1333 = vmatpush.msra.mxu0 %v1156_v36  ;;  %v1081_v3 = vsel %vm461_vm1, %v2132_v34, %v2186_v55 }
 0x47d   : > { %v2157_v32 = vunpack.i.h.bf16 %v2155_v51  ;;  %v2156_v56 = vunpack.i.l.bf16 %v2155_v51  ;;  %v2175_v63 = vpop.permute.xlu0 %2174 }
 0x47e   : > { %v2177_v49 = vunpack.i.h.bf16 %v2175_v63  ;;  %v2176_v0 = vunpack.i.l.bf16 %v2175_v63  ;;  %1288 = vmatpush.msrb.mxu1 %v1153_v43  ;;  %1334 = vmatpush.msra.mxu0 %v1154_v52  ;;  %v1082_v43 = vsel %vm461_vm1, %v2186_v55, %v2187_v21  ;;  %v1031_v63 = vmul.f32 %v2411_v11, %v2768_v10  ;;  %v1262_v10 = vld [vmem:[%s3125_s5 + $0x18] sm:$0xff] }
 0x47f   : > { %v1135_v58 = vsel %vm489_vm15, %v2156_v56, %v2157_v32  ;;  %v1136_v42 = vsel %vm489_vm15, %v2157_v32, %v2161_v50  ;;  %v1260_v56 = vld [vmem:[%s3125_s5 + $0x8] sm:$0xff] }
 0x480   : > { %1289 = vmatpush.msrb.mxu1 %v1135_v58  ;;  %v1253_v35 = vsel %vm553_vm10, %v2176_v0, %v2177_v49  ;;  %1335 = vmatpush.msra.mxu0 %v1136_v42 }
 0x481   : > { %1318 = vmatpush.msrb.mxu2 %v1253_v35 }
 0x482   : > { %1290 = vmatpush.msrb.mxu1 %v1133_v4  ;;  %1336 = vmatpush.msra.mxu0 %v1134_v6 }
 0x484   : > { %v2165_v13 = vpop.permute.xlu1 %2164 }
 0x485   : > { %v2167_v17 = vunpack.i.h.bf16 %v2165_v13  ;;  %v2166_v20 = vunpack.i.l.bf16 %v2165_v13  ;;  %v2190_v8 = vpop.permute.xlu0 %2189 }
 0x486   : > { %v2191_v36 = vunpack.i.l.bf16 %v2190_v8  ;;  %v2192_v52 = vunpack.i.h.bf16 %v2190_v8 }
 0x487   : > { %v1109_v54 = vsel %vm475_vm0, %v2166_v20, %v2167_v17  ;;  %v1110_v61 = vsel %vm475_vm0, %v2167_v17, %v2171_v23 }
 0x488   : > { %1291 = vmatpush.msrb.mxu1 %v1109_v54  ;;  %1337 = vmatpush.msra.mxu0 %v1110_v61  ;;  %v1252_v14 = vsel %vm553_vm10, %v2191_v36, %v2192_v52 }
 0x48a   : > { %1292 = vmatpush.msrb.mxu1 %v1107_v33  ;;  %1338 = vmatpush.msra.mxu0 %v1108_v25 }
 0x48c   : > { %v2180_v46 = vpop.permute.xlu1 %2179  ;;  %1293 = vmatpush.msrb.mxu1 %v1083_v59  ;;  %1339 = vmatpush.msra.mxu0 %v1084_v44 }
 0x48d   : > { %v2182_v50 = vunpack.i.h.bf16 %v2180_v46  ;;  %v2181_v51 = vunpack.i.l.bf16 %v2180_v46 }
 0x48e   : > { %1294 = vmatpush.msrb.mxu1 %v1081_v3  ;;  %1340 = vmatpush.msra.mxu0 %v1082_v43 }
 0x48f   : > { %v1251_v57 = vsel %vm553_vm10, %v2182_v50, %v2191_v36  ;;  %v1254_v32 = vsel %vm553_vm10, %v2177_v49, %v2181_v51 }
 0x490   : > { %1295 = vmatpush.msrb.mxu1 %v1033_v39  ;;  %1319 = vmatpush.msrb.mxu2 %v1251_v57 }
 0x491   : > { %1341 = vmatpush.msra.mxu0 %v1034_v60  ;;  %1364 = vmatpush.msra.mxu3 %v1254_v32 }
 0x492   : > { %1852 = vmatmul.msk.f32.vlgmr.msrb.gmra.mxu2 %vm409_vm8, %v1260_v56  ;;  %1296 = vmatpush.msrb.mxu1 %v1031_v63 }
 0x493   : > { %1342 = vmatpush.msra.mxu0 %v1032_v9  ;;  %1365 = vmatpush.msra.mxu3 %v1252_v14 }
 0x494   : > { %1297 = vmatmul.f32.vlgmr.msrb.gmra.mxu1 %v1259_v62  ;;  %1343 = vmatmul.f32.vlgmr.msra.gmra.mxu0 %v1259_v62  ;;  %v1273_v15 = vpop.permute.xlu1 %1272 }
 0x495   : > { %1854 = vmatmul.msk.f32.vlgmr.msra.gmra.mxu3 %vm409_vm8, %v1260_v56 }
 0x49a   : > { %1853 = vmatmul.msk.f32.gmra.mxu2 %vm409_vm8, %v1262_v10 }
 0x49c   : > { %1300 = vmatmul.f32.gmra.mxu1 %v1261_v7  ;;  %1346 = vmatmul.f32.gmra.mxu0 %v1261_v7 }
 0x49d   : > { %1855 = vmatmul.msk.f32.gmra.mxu3 %vm409_vm8, %v1262_v10 }
 0x4bb   : > { %v1268_v49 = vpop.permute.xlu2 %1267 }
 0x511   : > { %v1298_v0 = vpop.f32.mrf.mxu1  ;;  %v1344_v18 = vpop.f32.mrf.mxu0 }
 0x512   : > { %v1299_v58 = vadd.f32 %v1298_v0, %v1268_v49  ;;  %v1345_v20 = vadd.f32 %v1344_v18, %v1268_v49 }
 0x515   : > { %v1321_v42 = vpop.f32.mrf.mxu2 }
 0x516   : > { %v1322_v35 = vadd.f32 %v1321_v42, %v1299_v58 }
 0x518   : > { %v1377_v4 = vmul.f32 0.01, %v1322_v35  ;;  %v1367_v6 = vpop.f32.mrf.mxu3  ;;  %vm1373_vm6 = vcmp.gt.f32.partialorder %v1322_v35, 0.0 }
 0x519   : > { %v1301_v23 = vpop.f32.mrf.mxu1  ;;  %v1347_v1 = vpop.f32.mrf.mxu0  ;;  %v1368_v55 = vadd.f32 %v1367_v6, %v1345_v20 }
 0x51a   : > { %v1381_v13 = vsel %vm1373_vm6, %v1322_v35, %v1377_v4  ;;  %v1302_v5 = vadd.f32 %v1301_v23, %v1273_v15  ;;  %v1348_v30 = vadd.f32 %v1347_v1, %v1273_v15 }
 0x51b   : > { %1389 = vrot.lane.b32.xlu2 %v1381_v13, %s2330_s15  ;;  %v1378_v25 = vmul.f32 0.01, %v1368_v55  ;;  %vm1374_vm2 = vcmp.gt.f32.partialorder %v1368_v55, 0.0 }
 0x51d   : > { %v1324_v17 = vpop.f32.mrf.mxu2  ;;  %v1382_v34 = vsel %vm1374_vm2, %v1368_v55, %v1378_v25  ;;  %v1638_v25 = vld [vmem:[%s3128_s8] sm:$0xf] }
 0x51e   : > { %v1325_v19 = vadd.f32 %v1324_v17, %v1302_v5 }
 0x520   : > { %v1379_v22 = vmul.f32 0.01, %v1325_v19  ;;  %v1370_v54 = vpop.f32.mrf.mxu3  ;;  %vm1375_vm7 = vcmp.gt.f32.partialorder %v1325_v19, 0.0 }
 0x521   : > { %v1371_v61 = vadd.f32 %v1370_v54, %v1348_v30 }
 0x522   : > { %v1383_v2 = vsel %vm1375_vm7, %v1325_v19, %v1379_v22 }
 0x523   : > { %v1380_v21 = vmul.f32 0.01, %v1371_v61  ;;  %1393 = vrot.lane.b32.xlu0 %v1383_v2, %s2330_s15  ;;  %vm1376_vm9 = vcmp.gt.f32.partialorder %v1371_v61, 0.0 }
 0x525   : > { %v1384_v33 = vsel %vm1376_vm9, %v1371_v61, %v1380_v21 }
 0x526   : > { %1395 = vrot.lane.b32.xlu1 %v1384_v33, %s2330_s15 }
 0x52b   : > { %1391 = vrot.lane.b32.xlu0 %v1382_v34, %s2330_s15 }
 0x575   : > { %v1390_v8 = vpop.permute.xlu2 %1389 }
 0x576   : > { %v2956_v44 = vsel %vm380_vm4, 0.0, %v1390_v8 }
 0x577   : > { %v1431_v56 = vmul.f32 %v2443_v28, %v2956_v44  ;;  %v1425_v62 = vmul.f32 %v2467_v37, %v2956_v44  ;;  %v1413_v23 = vmul.f32 %v2491_v48, %v2956_v44 }
 0x595   : > { %v1394_v59 = vpop.permute.xlu0 %1393 }
 0x596   : > { %v2959_v46 = vsel %vm380_vm4, 0.0, %v1394_v59 }
 0x597   : > { %v2234_v3 = vpack.i.bf16 %v2956_v44, %v2959_v46  ;;  %v1434_v32 = vmul.f32 %v2443_v28, %v2959_v46  ;;  %v1428_v9 = vmul.f32 %v2467_v37, %v2959_v46  ;;  %v1422_v49 = vmul.f32 %v2471_v40, %v2959_v46 }
 0x598   : > { %v1396_v36 = vpop.permute.xlu1 %1395  ;;  %v1419_v37 = vmul.f32 %v2471_v40, %v2956_v44  ;;  %v1440_v21 = vmul.f32 %v2437_v24, %v2959_v46 }
 0x599   : > { %v2964_v50 = vsel %vm380_vm4, %v1394_v59, %v1396_v36  ;;  %v1408_v51 = vsel %vm380_vm4, %v1396_v36, 0.0  ;;  %2235 = vrot.lane.b32.xlu0 %v2234_v3, %s2337_s21  ;;  %v2259_v63 = vpack.i.bf16 %v1431_v56, %v1434_v32  ;;  %v2269_v7 = vpack.i.bf16 %v1425_v62, %v1428_v9 }
 0x59a   : > { %v2229_v43 = vpack.i.bf16 %v1408_v51, %v2964_v50  ;;  %v1435_v14 = vmul.f32 %v2964_v50, %v2455_v31  ;;  %v1436_v10 = vmul.f32 %v2441_v27, %v1408_v51  ;;  %v1429_v58 = vmul.f32 %v2964_v50, %v2475_v41 }
 0x59b   : > { %v1430_v42 = vmul.f32 %v2439_v26, %v1408_v51  ;;  %v2279_v35 = vpack.i.bf16 %v1419_v37, %v1422_v49  ;;  %v1423_v13 = vmul.f32 %v2964_v50, %v2483_v45  ;;  %v1424_v15 = vmul.f32 %v2469_v38, %v1408_v51 }
 0x59c   : > { %2230 = vrot.lane.b32.xlu1 %v2229_v43, %s2337_s21  ;;  %v2254_v28 = vpack.i.bf16 %v1436_v10, %v1435_v14  ;;  %v1418_v20 = vmul.f32 %v2489_v47, %v1408_v51  ;;  %v1442_v54 = vmul.f32 %v2418_v16, %v1408_v51  ;;  %v1441_v61 = vmul.f32 %v2964_v50, %v2447_v29 }
 0x59d   : > { %v1392_v52 = vpop.permute.xlu0 %1391  ;;  %v2264_v6 = vpack.i.bf16 %v1430_v42, %v1429_v58  ;;  %v2274_v17 = vpack.i.bf16 %v1424_v15, %v1423_v13  ;;  %v1637_v13 = vld [vmem:[%s3127_s7] sm:$0xff] }
 0x59e   : > { %v2971_v39 = vsel %vm380_vm4, %v1390_v8, %v1392_v52  ;;  %v1407_v57 = vsel %vm380_vm4, %v1392_v52, 0.0  ;;  %v2299_v33 = vpack.i.bf16 %v1441_v61, %v1440_v21  ;;  %1645 = vst [vmem:[#allocation1] ss:$2 sm:$0xff] %v1637_v13 }
 0x59f   : > { %v2194_v60 = vpack.i.bf16 %v1407_v57, %v2971_v39  ;;  %v1432_v0 = vmul.f32 %v2971_v39, %v2455_v31  ;;  %v1433_v18 = vmul.f32 %v2441_v27, %v1407_v57  ;;  %v1416_v27 = vmul.f32 %v2491_v48, %v2959_v46 }
 0x5a0   : > { %v1426_v31 = vmul.f32 %v2971_v39, %v2475_v41  ;;  %v1427_v40 = vmul.f32 %v2439_v26, %v1407_v57  ;;  %v1420_v26 = vmul.f32 %v2971_v39, %v2483_v45  ;;  %v1421_v41 = vmul.f32 %v2469_v38, %v1407_v57 }
 0x5a1   : > { %2245 = vrot.lane.b32.xlu0 %v2234_v3, %s2339_s23  ;;  %2195 = vrot.lane.b32.xlu2 %v2194_v60, %s2337_s21  ;;  %v2209_v4 = vpack.i.bf16 %v1433_v18, %v1432_v0  ;;  %v2289_v5 = vpack.i.bf16 %v1413_v23, %v1416_v27  ;;  %v1417_v48 = vmul.f32 %v2964_v50, %v2501_v53 }
 0x5a2   : > { %v2214_v1 = vpack.i.bf16 %v1427_v40, %v1426_v31  ;;  %v2219_v19 = vpack.i.bf16 %v1421_v41, %v1420_v26  ;;  %v1439_v22 = vmul.f32 %v2418_v16, %v1407_v57  ;;  %v1414_v45 = vmul.f32 %v2971_v39, %v2501_v53 }
 0x5a3   : > { %v2284_v30 = vpack.i.bf16 %v1418_v20, %v1417_v48  ;;  %v1415_v38 = vmul.f32 %v2489_v47, %v1407_v57  ;;  %v1438_v47 = vmul.f32 %v2971_v39, %v2447_v29  ;;  %v1437_v16 = vmul.f32 %v2437_v24, %v2956_v44 }
 0x5a4   : > { %2240 = vrot.lane.b32.xlu1 %v2229_v43, %s2339_s23  ;;  %v2309_v55 = vpack.i.bf16 %v1439_v22, %v1442_v54 }
 0x5a5   : > { %v2224_v2 = vpack.i.bf16 %v1415_v38, %v1414_v45  ;;  %v2304_v53 = vpack.i.bf16 %v1438_v47, %v1437_v16 }
 0x5a9   : > { %2260 = vrot.lane.b32.xlu0 %v2259_v63, %s2341_s25  ;;  %2200 = vrot.lane.b32.xlu2 %v2194_v60, %s2339_s23 }
 0x5ac   : > { %2250 = vrot.lane.b32.xlu1 %v2229_v43, %s2344_s28 }
 0x5b1   : > { %2270 = vrot.lane.b32.xlu0 %v2269_v7, %s2340_s24  ;;  %2205 = vrot.lane.b32.xlu2 %v2194_v60, %s2344_s28 }
 0x5b4   : > { %2255 = vrot.lane.b32.xlu1 %v2254_v28, %s2341_s25 }
 0x5b9   : > { %2280 = vrot.lane.b32.xlu0 %v2279_v35, %s2342_s26  ;;  %2210 = vrot.lane.b32.xlu2 %v2209_v4, %s2341_s25 }
 0x5bc   : > { %2265 = vrot.lane.b32.xlu1 %v2264_v6, %s2340_s24 }
 0x5c1   : > { %2290 = vrot.lane.b32.xlu0 %v2289_v5, %s2343_s27  ;;  %2215 = vrot.lane.b32.xlu2 %v2214_v1, %s2340_s24  ;;  %s1861_s24 = sshll.u32 %s3133_s10, 3 }
 0x5c4   : > { %2275 = vrot.lane.b32.xlu1 %v2274_v17, %s2342_s26 }
 0x5c9   : > { %2295 = vrot.lane.b32.xlu0 %v2234_v3, %s2344_s28  ;;  %2220 = vrot.lane.b32.xlu2 %v2219_v19, %s2342_s26 }
 0x5cc   : > { %2285 = vrot.lane.b32.xlu1 %v2284_v30, %s2343_s27 }
 0x5d1   : > { %2310 = vrot.lane.b32.xlu0 %v2309_v55, %s2338_s22  ;;  %2225 = vrot.lane.b32.xlu2 %v2224_v2, %s2343_s27  ;;  %s332_s27 = scalar_lea.vmem %s3129_s9, %s1861_s24 }
 0x5d4   : > { %2300 = vrot.lane.b32.xlu1 %v2299_v33, %s2338_s22 }
 0x5d9   : > { %2305 = vrot.lane.b32.xlu2 %v2304_v53, %s2338_s22 }
 0x5dc   : > { %1641 = vperm.xlu1 %2072, %v1638_v25  }
 0x5fb   : > { %v2196_v34 = vpop.permute.xlu2 %2195 }
 0x5fc   : > { %v2198_v3 = vunpack.i.h.bf16 %v2196_v34  ;;  %v2197_v36 = vunpack.i.l.bf16 %v2196_v34 }
 0x5fe   : > { %v1604_v56 = vsel %vm539_vm11, %v2197_v36, %v2198_v3 }
 0x603   : > { %v3050_v8 = vpop.permute.xlu2 %2200 }
 0x604   : > { %v2203_v38 = vunpack.i.h.bf16 %v3050_v8  ;;  %v2202_v54 = vunpack.i.l.bf16 %v3050_v8 }
 0x60b   : > { %v2236_v59 = vpop.permute.xlu0 %2235  ;;  %v3052_v24 = vpop.permute.xlu2 %2205 }
 0x60c   : > { %v2238_v51 = vunpack.i.h.bf16 %v2236_v59  ;;  %v2237_v43 = vunpack.i.l.bf16 %v2236_v59  ;;  %v1532_v59 = vsel %vm500_vm14, %v2202_v54, %v2203_v38  ;;  %v1410_v38 = vmul.f32 %v2413_v12, %v2971_v39 }
 0x60e   : > { %v2231_v29 = vpop.permute.xlu1 %2230  ;;  %v1603_v9 = vsel %vm539_vm11, %v2238_v51, %v2197_v36 }
 0x60f   : > { %v2233_v52 = vunpack.i.h.bf16 %v2231_v29  ;;  %v2232_v57 = vunpack.i.l.bf16 %v2231_v29 }
 0x611   : > { %v1605_v60 = vsel %vm539_vm11, %v2237_v43, %v2232_v57  ;;  %v1606_v32 = vsel %vm539_vm11, %v2232_v57, %v2233_v52 }
 0x612   : > { %1651 = vmatpush.msra.mxu2 %v1605_v60  ;;  %1691 = vmatpush.msrb.mxu3 %v1606_v32 }
 0x613   : > { %v2246_v63 = vpop.permute.xlu0 %2245  ;;  %v2211_v14 = vpop.permute.xlu2 %2210 }
 0x614   : > { %1692 = vmatpush.msrb.mxu3 %v1604_v56  ;;  %1652 = vmatpush.msra.mxu2 %v1603_v9  ;;  %v2213_v0 = vunpack.i.h.bf16 %v2211_v14  ;;  %v2212_v18 = vunpack.i.l.bf16 %v2211_v14  ;;  %v2248_v61 = vunpack.i.h.bf16 %v2246_v63  ;;  %v2247_v55 = vunpack.i.l.bf16 %v2246_v63 }
 0x616   : > { %v2241_v62 = vpop.permute.xlu1 %2240  ;;  %v1584_v31 = vsel %vm528_vm12, %v2212_v18, %v2213_v0  ;;  %v1531_v8 = vsel %vm500_vm14, %v2248_v61, %v2202_v54  ;;  %v1647_v54 = vld.sshfl [vmem:[#allocation1 + $0x8] sm:$0xff pattern:$0x75316420] }
 0x617   : > { %v2243_v19 = vunpack.i.h.bf16 %v2241_v62  ;;  %v2242_v30 = vunpack.i.l.bf16 %v2241_v62 }
 0x619   : > { %v1533_v47 = vsel %vm500_vm14, %v2247_v55, %v2242_v30  ;;  %v1534_v16 = vsel %vm500_vm14, %v2242_v30, %v2243_v19  ;;  %v1412_v19 = vmul.f32 %v2413_v12, %v2964_v50  ;;  %v1409_v30 = vmul.f32 %v2411_v11, %v2956_v44 }
 0x61b   : > { %v2261_v10 = vpop.permute.xlu0 %2260  ;;  %v2216_v49 = vpop.permute.xlu2 %2215 }
 0x61c   : > { %v2263_v58 = vunpack.i.h.bf16 %v2261_v10  ;;  %v2262_v42 = vunpack.i.l.bf16 %v2261_v10  ;;  %v2218_v15 = vunpack.i.h.bf16 %v2216_v49  ;;  %v2217_v5 = vunpack.i.l.bf16 %v2216_v49 }
 0x61e   : > { %v3058_v7 = vpop.permute.xlu1 %2250  ;;  %v1583_v23 = vsel %vm528_vm12, %v2263_v58, %v2212_v18  ;;  %v1558_v2 = vsel %vm514_vm13, %v2217_v5, %v2218_v15 }
 0x61f   : > { %v2253_v0 = vunpack.i.h.bf16 %v3058_v7  ;;  %v2252_v18 = vunpack.i.l.bf16 %v3058_v7 }
 0x623   : > { %v2271_v28 = vpop.permute.xlu0 %2270  ;;  %v2221_v17 = vpop.permute.xlu2 %2220 }
 0x624   : > { %v2273_v26 = vunpack.i.h.bf16 %v2271_v28  ;;  %v2272_v41 = vunpack.i.l.bf16 %v2271_v28  ;;  %v2223_v53 = vunpack.i.h.bf16 %v2221_v17  ;;  %v2222_v25 = vunpack.i.l.bf16 %v2221_v17 }
 0x626   : > { %v2256_v37 = vpop.permute.xlu1 %2255  ;;  %v1557_v21 = vsel %vm514_vm13, %v2273_v26, %v2217_v5  ;;  %v1512_v60 = vsel %vm489_vm15, %v2222_v25, %v2223_v53 }
 0x627   : > { %v2258_v35 = vunpack.i.h.bf16 %v2256_v37  ;;  %v2257_v4 = vunpack.i.l.bf16 %v2256_v37 }
 0x629   : > { %v1585_v6 = vsel %vm528_vm12, %v2262_v42, %v2257_v4  ;;  %v1586_v27 = vsel %vm528_vm12, %v2257_v4, %v2258_v35  ;;  %v2208_v35 = vunpack.i.h.bf16 %v3052_v24  ;;  %v2207_v4 = vunpack.i.l.bf16 %v3052_v24 }
 0x62a   : > { %1653 = vmatpush.msra.mxu2 %v1585_v6  ;;  %1693 = vmatpush.msrb.mxu3 %v1586_v27 }
 0x62b   : > { %v2281_v40 = vpop.permute.xlu0 %2280  ;;  %v2226_v43 = vpop.permute.xlu2 %2225  ;;  %v1460_v24 = vsel %vm461_vm1, %v2207_v4, %v2208_v35 }
 0x62c   : > { %1694 = vmatpush.msrb.mxu3 %v1584_v31  ;;  %1654 = vmatpush.msra.mxu2 %v1583_v23  ;;  %v2283_v3 = vunpack.i.h.bf16 %v2281_v40  ;;  %v2282_v36 = vunpack.i.l.bf16 %v2281_v40  ;;  %v2228_v56 = vunpack.i.h.bf16 %v2226_v43  ;;  %v2227_v63 = vunpack.i.l.bf16 %v2226_v43 }
 0x62d   : > { %v1462_v23 = vsel %vm461_vm1, %v2252_v18, %v2253_v0 }
 0x62e   : > { %v2266_v1 = vpop.permute.xlu1 %2265  ;;  %v1511_v32 = vsel %vm489_vm15, %v2283_v3, %v2222_v25  ;;  %v1486_v31 = vsel %vm475_vm0, %v2227_v63, %v2228_v56 }
 0x62f   : > { %v2268_v48 = vunpack.i.h.bf16 %v2266_v1  ;;  %v2267_v20 = vunpack.i.l.bf16 %v2266_v1 }
 0x631   : > { %v1559_v22 = vsel %vm514_vm13, %v2272_v41, %v2267_v20  ;;  %v1560_v45 = vsel %vm514_vm13, %v2267_v20, %v2268_v48  ;;  %v1411_v41 = vmul.f32 %v2411_v11, %v2959_v46 }
 0x632   : > { %1655 = vmatpush.msra.mxu2 %v1559_v22  ;;  %1695 = vmatpush.msrb.mxu3 %v1560_v45  ;;  %v1646_v22 = vld.sshfl [vmem:[#allocation1] sm:$0xff pattern:$0x75316420] }
 0x633   : > { %v2291_v33 = vpop.permute.xlu0 %2290  ;;  %v2306_v6 = vpop.permute.xlu2 %2305 }
 0x634   : > { %1696 = vmatpush.msrb.mxu3 %v1558_v2  ;;  %1656 = vmatpush.msra.mxu2 %v1557_v21  ;;  %v2293_v14 = vunpack.i.h.bf16 %v2291_v33  ;;  %v2292_v10 = vunpack.i.l.bf16 %v2291_v33  ;;  %v2308_v13 = vunpack.i.h.bf16 %v2306_v6  ;;  %v2307_v5 = vunpack.i.l.bf16 %v2306_v6 }
 0x636   : > { %v2276_v34 = vpop.permute.xlu1 %2275  ;;  %1657 = vmatpush.msra.mxu2 %v1533_v47  ;;  %1697 = vmatpush.msrb.mxu3 %v1534_v16  ;;  %v1485_v40 = vsel %vm475_vm0, %v2293_v14, %v2227_v63  ;;  %v1629_v45 = vsel %vm553_vm10, %v2307_v5, %v2308_v13 }
 0x637   : > { %v2278_v29 = vunpack.i.h.bf16 %v2276_v34  ;;  %v2277_v51 = vunpack.i.l.bf16 %v2276_v34 }
 0x638   : > { %1658 = vmatpush.msra.mxu2 %v1531_v8  ;;  %1698 = vmatpush.msrb.mxu3 %v1532_v59 }
 0x639   : > { %v1513_v52 = vsel %vm489_vm15, %v2282_v36, %v2277_v51  ;;  %v1514_v57 = vsel %vm489_vm15, %v2277_v51, %v2278_v29  ;;  %vm1772_vm15 = vcmask 1043456  }
 0x63a   : > { %1659 = vmatpush.msra.mxu2 %v1513_v52  ;;  %1699 = vmatpush.msrb.mxu3 %v1514_v57 }
 0x63b   : > { %v2296_v9 = vpop.permute.xlu0 %2295 }
 0x63c   : > { %1700 = vmatpush.msrb.mxu3 %v1512_v60  ;;  %1660 = vmatpush.msra.mxu2 %v1511_v32  ;;  %v2297_v37 = vunpack.i.l.bf16 %v2296_v9  ;;  %v2298_v27 = vunpack.i.h.bf16 %v2296_v9 }
 0x63e   : > { %v2286_v62 = vpop.permute.xlu1 %2285  ;;  %v1461_v7 = vsel %vm461_vm1, %v2297_v37, %v2252_v18  ;;  %v1459_v26 = vsel %vm461_vm1, %v2298_v27, %v2207_v4 }
 0x63f   : > { %v2288_v28 = vunpack.i.h.bf16 %v2286_v62  ;;  %v2287_v49 = vunpack.i.l.bf16 %v2286_v62 }
 0x641   : > { %v1487_v58 = vsel %vm475_vm0, %v2292_v10, %v2287_v49  ;;  %v1488_v42 = vsel %vm475_vm0, %v2287_v49, %v2288_v28 }
 0x642   : > { %1661 = vmatpush.msra.mxu2 %v1487_v58  ;;  %1701 = vmatpush.msrb.mxu3 %v1488_v42 }
 0x643   : > { %v2311_v48 = vpop.permute.xlu0 %2310 }
 0x644   : > { %1702 = vmatpush.msrb.mxu3 %v1486_v31  ;;  %1662 = vmatpush.msra.mxu2 %v1485_v40  ;;  %v2313_v46 = vunpack.i.h.bf16 %v2311_v48  ;;  %v2312_v61 = vunpack.i.l.bf16 %v2311_v48 }
 0x646   : > { %v2301_v15 = vpop.permute.xlu1 %2300  ;;  %1663 = vmatpush.msra.mxu2 %v1461_v7  ;;  %1703 = vmatpush.msrb.mxu3 %v1462_v23  ;;  %v1630_v11 = vsel %vm553_vm10, %v2308_v13, %v2313_v46 }
 0x647   : > { %v2303_v1 = vunpack.i.h.bf16 %v2301_v15  ;;  %v2302_v17 = vunpack.i.l.bf16 %v2301_v15 }
 0x648   : > { %1664 = vmatpush.msra.mxu2 %v1459_v26  ;;  %1704 = vmatpush.msrb.mxu3 %v1460_v24 }
 0x649   : > { %v1631_v20 = vsel %vm553_vm10, %v2302_v17, %v2303_v1  ;;  %v1632_v50 = vsel %vm553_vm10, %v2303_v1, %v2312_v61 }
 0x64a   : > { %1665 = vmatpush.msra.mxu2 %v1411_v41  ;;  %1685 = vmatpush.msra.mxu1 %v1631_v20 }
 0x64b   : > { %1705 = vmatpush.msrb.mxu3 %v1412_v19 }
 0x64c   : > { %1666 = vmatpush.msra.mxu2 %v1409_v30  ;;  %1686 = vmatpush.msra.mxu1 %v1629_v45 }
 0x64d   : > { %1706 = vmatpush.msrb.mxu3 %v1410_v38  ;;  %1667 = vmatmul.f32.vlgmr.msra.gmra.mxu2 %v1646_v22 }
 0x64e   : > { %1856 = vmatmul.msk.f32.vlgmr.msra.gmra.mxu1 %vm409_vm8, %v1647_v54  ;;  %1707 = vmatmul.f32.vlgmr.msrb.gmra.mxu3 %v1646_v22  ;;  %v1642_v12 = vpop.permute.xlu1 %1641 }
 0x64f   : > { %1725 = vmatpush.msrb.mxu1 %v1632_v50 }
 0x651   : > { %1726 = vmatpush.msrb.mxu1 %v1630_v11 }
 0x656   : > { %1857 = vmatmul.msk.f32.vlgmr.msrb.gmra.mxu1 %vm409_vm8, %v1647_v54 }
 0x6cb   : > { %v1688_v44 = vpop.f32.mrf.mxu1 }
 0x6d0   : > { %v1668_v39 = vpop.f32.mrf.mxu2 }
 0x6d1   : > { %v1669_v55 = vadd.f32 %v1668_v39, %v1642_v12  ;;  %v1708_v2 = vpop.f32.mrf.mxu3 }
 0x6d2   : > { %v1709_v21 = vadd.f32 %v1708_v2, %v1642_v12 }
 0x6d3   : > { %v1689_v33 = vadd.f32 %v1688_v44, %v1669_v55  ;;  %v1728_v47 = vpop.f32.mrf.mxu1 }
 0x6d4   : > { %v1729_v16 = vadd.f32 %v1728_v47, %v1709_v21 }
 0x6d5   : > { %v1731_v53 = vsub.f32 0.0, %v1689_v33 }
 0x6d6   : > { %v1732_v25 = vsub.f32 0.0, %v1729_v16 }
 0x6d7   : > { %v1733_v34 = vmul.f32 1.442695, %v1731_v53 }
 0x6d8   : > { %v1735_v8 = vmul.f32 1.442695, %v1732_v25 }
 0x6d9   : > { %2314 = vpow2.f32 %v1733_v34 }
 0x6da   : > { %2316 = vpow2.f32 %v1735_v8 }
 0x6df   : > { %v2315_v59 = vpop.eup %2314 }
 0x6e0   : > { %v2317_v3 = vpop.eup %2316  ;;  %v1737_v36 = vadd.f32 1.0, %v2315_v59 }
 0x6e1   : > { %v1738_v29 = vadd.f32 1.0, %v2317_v3 }
 0x6e2   : > { %2318 = vrcp.f32 %v1737_v36  ;;  %vm1744_vm10 = vweird.f32 %v1737_v36  ;;  %v1750_v10 = vand.u32 2147483648, %v1737_v36  ;;  %v1748_v49 = vand.u32 2147483647, %v1737_v36 }
 0x6e3   : > { %2320 = vrcp.f32 %v1738_v29  ;;  %v1765_v63 = vand.u32 2147483648, %v1738_v29  ;;  %v1763_v62 = vand.u32 2147483647, %v1738_v29  ;;  %vm1759_vm12 = vweird.f32 %v1738_v29 }
 0x6e4   : > { %v1751_v42 = vor.u32 1.1754944e-38, %v1750_v10  ;;  %vm1749_vm0 = vcmp.eq.f32.partialorder %v1748_v49, 8.507059e+37 }
 0x6e5   : > { %v1766_v18 = vor.u32 1.1754944e-38, %v1765_v63  ;;  %vm1764_vm14 = vcmp.eq.f32.partialorder %v1763_v62, 8.507059e+37 }
 0x6e8   : > { %v2319_v51 = vpop.eup %2318 }
 0x6e9   : > { %v2321_v43 = vpop.eup %2320  ;;  %v1740_v52 = vmul.f32 %v2319_v51, %v1737_v36  ;;  %vm1745_vm4 = vweird.f32 %v2319_v51 }
 0x6ea   : > { %v1755_v57 = vmul.f32 %v2321_v43, %v1738_v29  ;;  %vm1760_vm8 = vweird.f32 %v2321_v43  ;;  %vm3107_vm11 = vmor %vm1744_vm10, %vm1745_vm4 }
 0x6eb   : > { %v1741_v60 = vsub.f32 1.0, %v1740_v52  ;;  %vm1761_vm13 = vmor %vm1759_vm12, %vm1760_vm8 }
 0x6ec   : > { %v1756_v32 = vsub.f32 1.0, %v1755_v57 }
 0x6ed   : > { %v1742_v56 = vmul.f32 %v2319_v51, %v1741_v60 }
 0x6ee   : > { %v1757_v9 = vmul.f32 %v2321_v43, %v1756_v32 }
 0x6ef   : > { %v1743_v14 = vadd.f32 %v2319_v51, %v1742_v56 }
 0x6f0   : > { %v1758_v0 = vadd.f32 %v2321_v43, %v1757_v9 }
 0x6f1   : > { %v1747_v37 = vsel %vm3107_vm11, %v2319_v51, %v1743_v14 }
 0x6f2   : > { %v1762_v58 = vsel %vm1761_vm13, %v2321_v43, %v1758_v0  ;;  %v1752_v6 = vsel %vm1749_vm0, %v1751_v42, %v1747_v37 }
 0x6f3   : > { %v1767_v35 = vsel %vm1764_vm14, %v1766_v18, %v1762_v58 }
 0x6f4   : > { %v1771_v4 = vrot.slane %v1767_v35, 4 }
 0x6f6   : > { %v1773_v27 = vsel %vm1772_vm15, %v1752_v6, %v1771_v4 }
 0x6f7   : > { %1775 = vst [vmem:[%s332_s27] sm:$0xff] %v1773_v27 }
 0x6f8 PF: > { %s19_s30 = sadd.s32 1, %s2328_s30  }
 0x6f9   : > { %p16_p4 = scmp.ge.s32.totalorder %s19_s30, 4  }
 0x6fb   :  { %18 = sbr.rel (!%p16_p4) target bundleno = 1 (0x1), region = 86 }

</bundles_post_ra>
